<compile_context>
chip_gen: v7x
topology: tpu7x:2x2x1
jax: 0.10.0
libtpu: 0.0.40
codegen_flags: <defaults>
</compile_context>

<pallas_src>
import math
from functools import partial

import numpy as np
import jax
import jax.numpy as jnp
from jax.experimental import pallas as pl
from jax.experimental.pallas import tpu as pltpu


# ----------------------------- config --------------------------------------
class Cfg:
    sr = 22050
    hop_length = 512
    pe_bpm_len = 1
    inst_all = ["mix", "drums", "bass", "other", "vocals"]


# =============================================================================
# 1) AddPositionalEncodingBasedBPM  (the reviewed kernel)
# =============================================================================
def _pe_add_kernel(beat_ref, x_ref, invfreq_ref, o_ref):
    # beat_ref    : SMEM int32 [B]   (scalar prefetch: per-batch beat length)
    # x_ref       : VMEM (1, TS, D)
    # invfreq_ref : VMEM (1, D)
    # o_ref       : VMEM (1, TS, D)
    b = pl.program_id(0)
    s = pl.program_id(1)
    beat = beat_ref[b]

    ts = x_ref.shape[1]
    d = x_ref.shape[2]

    # Global time index for this S-tile as an (TS, 1) COLUMN: the integer mod
    # runs TS times (not TS*max_len) and no full-size int32 tiles are built.
    t = jax.lax.broadcasted_iota(jnp.int32, (ts, 1), 0) + s * ts
    pos = (t % beat + 1).astype(jnp.float32)            # 1-based table position
    w = pos * invfreq_ref[...]                           # (TS, D) via broadcast

    # Feature index i = lane+1 (1-based).  i even -> sin(w); i odd -> cos(w).
    # cos(w) == sin(w + pi/2), so a single EUP transcendental per element.
    lane = jax.lax.broadcasted_iota(jnp.int32, (ts, d), 1)
    phase = jnp.where(lane % 2 == 0, jnp.float32(np.pi / 2.0), jnp.float32(0.0))
    pe = jnp.sin(w + phase)

    o_ref[...] = x_ref[...] + pe[None].astype(o_ref.dtype)


def add_positional_encoding_based_bpm(x, bpm, inst, max_len, cfg=Cfg):
    """x: [B, S, D] f32, bpm: [B, n_inst] f32."""
    B, S, D = x.shape

    if inst == "mix":
        bpm_sel = bpm[:, 0]
    else:
        bpm_sel = bpm[:, cfg.inst_all.index(inst)]
    beat_len = (
        jnp.ceil(60.0 / bpm_sel * cfg.sr / cfg.hop_length).astype(jnp.int32)
        * cfg.pe_bpm_len
    )
    # Guard: bpm <= 0 or very low bpm (beat_len > max_len) would otherwise read
    # past / silently zero the PyTorch table; clamp to the valid range.
    beat_len = jnp.clip(beat_len, 1, max_len)

    # inv_freq[j] = 1 / 10000 ** ((j+1) / D)   (matches the module's table).
    inv_freq = (
        1.0 / np.power(10000.0, np.arange(1, D + 1, dtype=np.float64) / float(D))
    ).astype(np.float32)[None, :]
    inv_freq = jnp.asarray(inv_freq)                      # (1, D)

    # S-tile: largest aligned tile that keeps ~2 in + 2 out double buffers well
    # inside v7x's 64 MiB VMEM (each buffer capped at ~2 MiB).
    ts = S
    for cand in (2048, 1024, 512, 256, 128):
        if S % cand == 0 and cand * D * 4 <= 2 * 1024 * 1024:
            ts = cand
            break

    grid_spec = pltpu.PrefetchScalarGridSpec(
        num_scalar_prefetch=1,
        grid=(B, S // ts),
        in_specs=[
            pl.BlockSpec((1, ts, D), lambda b, s, beat: (b, s, 0)),
            pl.BlockSpec((1, D), lambda b, s, beat: (0, 0)),
        ],
        out_specs=pl.BlockSpec((1, ts, D), lambda b, s, beat: (b, s, 0)),
    )

    return pl.pallas_call(
        _pe_add_kernel,
        out_shape=jax.ShapeDtypeStruct((B, S, D), x.dtype),
        grid_spec=grid_spec,
        compiler_params=pltpu.CompilerParams(
            dimension_semantics=("parallel", "parallel")
        ),
        cost_estimate=pl.CostEstimate(
            flops=2 * B * S * D,
            transcendentals=B * S * D,
            bytes_accessed=2 * B * S * D * 4 + D * 4 + B * 4,
        ),
    )(beat_len, x, inv_freq)


# =============================================================================
# 2) TransformerEncoderLayer: MHA + LN + FFN + LN   (inference: dropout = id)
# =============================================================================
def _encoder_layer_kernel(
    x_ref,
    wq_ref, bq_ref, wk_ref, bk_ref, wv_ref, bv_ref, wo_ref, bo_ref,
    g1_ref, be1_ref, w1_ref, bf1_ref, w2_ref, bf2_ref, g2_ref, be2_ref,
    o_ref, *, heads,
):
    x = x_ref[0]                                          # (S, D)
    seq, dm = x.shape
    hd = dm // heads
    scale = 1.0 / math.sqrt(hd)

    # ---- multi-head self attention ----
    q = jnp.dot(x, wq_ref[...], preferred_element_type=jnp.float32) + bq_ref[...]
    k = jnp.dot(x, wk_ref[...], preferred_element_type=jnp.float32) + bk_ref[...]
    v = jnp.dot(x, wv_ref[...], preferred_element_type=jnp.float32) + bv_ref[...]

    # Head selection via lane masks: only full-width matmuls / adds are emitted
    # (no unaligned lane slicing / concatenation inside the kernel).
    lane = jax.lax.broadcasted_iota(jnp.int32, (1, dm), 1)
    ctx = jnp.zeros_like(x)
    for h in range(heads):                                # static unroll
        mask = (lane // hd == h).astype(jnp.float32)      # (1, D), this head's lanes
        qh = q * mask
        vh = v * mask
        sc = jnp.einsum("qd,kd->qk", qh, k,
                        preferred_element_type=jnp.float32) * scale
        sc = sc - jnp.max(sc, axis=-1, keepdims=True)
        p = jnp.exp(sc)
        p = p / jnp.sum(p, axis=-1, keepdims=True)
        ctx = ctx + jnp.einsum("qk,kd->qd", p, vh,
                               preferred_element_type=jnp.float32)

    attn = jnp.dot(ctx, wo_ref[...], preferred_element_type=jnp.float32) + bo_ref[...]

    def layer_norm(y, g, b):
        mu = jnp.mean(y, axis=-1, keepdims=True)
        diff = y - mu
        var = jnp.mean(diff * diff, axis=-1, keepdims=True)
        return diff * jax.lax.rsqrt(var + 1e-5) * g + b

    x1 = layer_norm(attn + x, g1_ref[...], be1_ref[...])

    # ---- feed-forward (Linear -> ReLU -> Linear); dropout_ffn = identity ----
    h1 = jnp.maximum(
        jnp.dot(x1, w1_ref[...], preferred_element_type=jnp.float32) + bf1_ref[...],
        0.0,
    )
    ffn = jnp.dot(h1, w2_ref[...], preferred_element_type=jnp.float32) + bf2_ref[...]
    x2 = layer_norm(ffn + x1, g2_ref[...], be2_ref[...])

    o_ref[...] = x2[None].astype(o_ref.dtype)


_PARAM_ORDER = ["wq", "bq", "wk", "bk", "wv", "bv", "wo", "bo",
                "g1", "be1", "w1", "bf1", "w2", "bf2", "g2", "be2"]


def transformer_encoder_layer(x, params, heads):
    B, S, D = x.shape
    weights = [params[n] for n in _PARAM_ORDER]
    w_specs = [pl.BlockSpec(w.shape, lambda b: (0, 0)) for w in weights]

    return pl.pallas_call(
        partial(_encoder_layer_kernel, heads=heads),
        out_shape=jax.ShapeDtypeStruct((B, S, D), x.dtype),
        grid=(B,),
        in_specs=[pl.BlockSpec((1, S, D), lambda b: (b, 0, 0))] + w_specs,
        out_specs=pl.BlockSpec((1, S, D), lambda b: (b, 0, 0)),
        compiler_params=pltpu.CompilerParams(dimension_semantics=("parallel",)),
    )(x, *weights)


def transformer_encoder_forward(x, bpm, inst, layer_params, heads, max_len, cfg=Cfg):
    x = add_positional_encoding_based_bpm(x, bpm, inst, max_len, cfg)
    for p in layer_params:
        x = transformer_encoder_layer(x, p, heads)
    return x


# =============================================================================
# Parameter init (weights pre-transposed so kernels compute x @ W)
# =============================================================================
def init_layer_params(key, d_model, d_ff):
    ks = jax.random.split(key, 16)
    s_d = 1.0 / math.sqrt(d_model)
    s_f = 1.0 / math.sqrt(d_ff)

    def rnd(k, shape, s):
        return jax.random.normal(k, shape, jnp.float32) * s

    return {
        "wq": rnd(ks[0], (d_model, d_model), s_d), "bq": rnd(ks[1], (1, d_model), 0.05),
        "wk": rnd(ks[2], (d_model, d_model), s_d), "bk": rnd(ks[3], (1, d_model), 0.05),
        "wv": rnd(ks[4], (d_model, d_model), s_d), "bv": rnd(ks[5], (1, d_model), 0.05),
        "wo": rnd(ks[6], (d_model, d_model), s_d), "bo": rnd(ks[7], (1, d_model), 0.05),
        "g1": 1.0 + rnd(ks[8], (1, d_model), 0.05), "be1": rnd(ks[9], (1, d_model), 0.05),
        "w1": rnd(ks[10], (d_model, d_ff), s_d), "bf1": rnd(ks[11], (1, d_ff), 0.05),
        "w2": rnd(ks[12], (d_ff, d_model), s_f), "bf2": rnd(ks[13], (1, d_model), 0.05),
        "g2": 1.0 + rnd(ks[14], (1, d_model), 0.05), "be2": rnd(ks[15], (1, d_model), 0.05),
    }


# =============================================================================
# NumPy (float64) reference, matching the PyTorch module semantics
# =============================================================================
def make_pe_table(d_model, max_len):
    pos = np.arange(1, max_len + 1, dtype=np.float64)[:, None]
    i = np.arange(1, d_model + 1, dtype=np.int64)[None, :]
    w = pos / np.power(10000.0, ((2 * i) // 2) / float(d_model))
    return np.where(i % 2 == 0, np.sin(w), np.cos(w))


def pe_reference(x, bpm, inst, max_len, cfg=Cfg):
    x = np.asarray(x, np.float64)
    bpm = np.asarray(bpm, np.float64)
    B, S, D = x.shape
    table = make_pe_table(D, max_len)
    out = np.empty_like(x)
    for b in range(B):
        bv = float(bpm[b, 0]) if inst == "mix" else float(bpm[b, cfg.inst_all.index(inst)])
        beat_len = math.ceil(60.0 / bv * cfg.sr / cfg.hop_length) * cfg.pe_bpm_len
        beat_len = max(1, min(beat_len, max_len))
        out[b] = x[b] + table[np.arange(S) % beat_len]
    return out


def _np_encoder_layer(x, p, heads):
    D = x.shape[-1]
    hd = D // heads
    f = lambda name: np.asarray(p[name], np.float64)

    q = x @ f("wq") + f("bq")
    k = x @ f("wk") + f("bk")
    v = x @ f("wv") + f("bv")
    ctx = np.zeros_like(x)
    for h in range(heads):
        sl = slice(h * hd, (h + 1) * hd)
        sc = q[..., sl] @ np.swapaxes(k[..., sl], -1, -2) / math.sqrt(hd)
        sc = sc - sc.max(-1, keepdims=True)
        pm = np.exp(sc)
        pm = pm / pm.sum(-1, keepdims=True)
        ctx[..., sl] = pm @ v[..., sl]
    attn = ctx @ f("wo") + f("bo")

    def ln(y, g, b):
        mu = y.mean(-1, keepdims=True)
        var = ((y - mu) ** 2).mean(-1, keepdims=True)
        return (y - mu) / np.sqrt(var + 1e-5) * g + b

    x1 = ln(attn + x, f("g1"), f("be1"))
    h1 = np.maximum(x1 @ f("w1") + f("bf1"), 0.0)
    ffn = h1 @ f("w2") + f("bf2")
    return ln(ffn + x1, f("g2"), f("be2"))


def reference_forward(x, bpm, inst, layer_params, heads, max_len, cfg=Cfg):
    y = pe_reference(x, bpm, inst, max_len, cfg)
    for p in layer_params:
        y = _np_encoder_layer(y, p, heads)
    return y


# =============================================================================
if __name__ == "__main__":
    B, S, D = 2, 16, 32
    heads, d_ff, n_layers, max_len = 4, 64, 2, 64

    key = jax.random.PRNGKey(0)
    kx, kb, kp = jax.random.split(key, 3)
    x = jax.random.normal(kx, (B, S, D), dtype=jnp.float32)
    # bpm in [80, 160) so the true beat_len stays within max_len
    bpm = jax.random.uniform(
        kb, (B, len(Cfg.inst_all)), dtype=jnp.float32, minval=80.0, maxval=160.0
    )
    layer_params = [init_layer_params(k, D, d_ff) for k in jax.random.split(kp, n_layers)]

    # --- check 1: the (reviewed) PE kernel against the exact table reference ---
    out_pe = jax.block_until_ready(
        add_positional_encoding_based_bpm(x, bpm, "mix", max_len)
    )
    np.testing.assert_allclose(
        np.asarray(out_pe), pe_reference(x, bpm, "mix", max_len),
        rtol=1e-4, atol=1e-4,
    )

    # --- check 2: the full TransformerEncoder forward ---
    out = jax.block_until_ready(
        transformer_encoder_forward(x, bpm, "mix", layer_params, heads, max_len)
    )
    ref = reference_forward(x, bpm, "mix", layer_params, heads, max_len)
    np.testing.assert_allclose(np.asarray(out), ref, rtol=2e-3, atol=2e-3)

    print("KERNEL_OK")
</pallas_src>

<mosaic_0001>
module attributes {stable_mosaic.version = 11 : i64} {
  func.func @_pe_add_kernel(%arg0: i32, %arg1: i32, %arg2: memref<2xi32, #tpu.memory_space<smem>>, %arg3: memref<1x16x32xf32, #tpu.memory_space<vmem>>, %arg4: memref<1x32xf32, #tpu.memory_space<vmem>>, %arg5: memref<1x16x32xf32, #tpu.memory_space<vmem>>) attributes {dimension_semantics = [#tpu.dimension_semantics<parallel>, #tpu.dimension_semantics<parallel>], iteration_bounds = array<i64: 2, 1>, scalar_prefetch = 1 : i64, scratch_operands = 0 : i64, tpu.core_type = #tpu.core_type<tc>, window_params = [{transform_indices = @transform_0, window_bounds = array<i64: 1, 16, 32>}, {pipeline_mode = #tpu.pipeline_mode<synchronous>, transform_indices = @transform_1, window_bounds = array<i64: 1, 32>}, {transform_indices = @transform_2, window_bounds = array<i64: 1, 16, 32>}]} {
    %0 = arith.index_cast %arg0 : i32 to index
    %1 = memref.load %arg2[%0] : memref<2xi32, #tpu.memory_space<smem>>
    %2 = tpu.iota {dimensions = array<i32: 0>} : vector<16x1xi32>
    %c16_i32 = arith.constant 16 : i32
    %3 = arith.muli %arg1, %c16_i32 : i32
    %4 = vector.broadcast %3 : i32 to vector<16x1xi32>
    %5 = arith.addi %2, %4 : vector<16x1xi32>
    %c0_i32 = arith.constant 0 : i32
    %6 = arith.cmpi eq, %1, %c0_i32 : i32
    %c1_i32 = arith.constant 1 : i32
    %7 = arith.select %6, %c1_i32, %1 : i32
    %8 = vector.broadcast %7 : i32 to vector<16x1xi32>
    %9 = arith.remsi %5, %8 : vector<16x1xi32>
    %c0_i32_0 = arith.constant 0 : i32
    %10 = vector.broadcast %c0_i32_0 : i32 to vector<16x1xi32>
    %11 = arith.cmpi ne, %9, %10 : vector<16x1xi32>
    %c0_i32_1 = arith.constant 0 : i32
    %12 = vector.broadcast %c0_i32_1 : i32 to vector<16x1xi32>
    %13 = arith.cmpi slt, %9, %12 : vector<16x1xi32>
    %c0_i32_2 = arith.constant 0 : i32
    %14 = arith.cmpi slt, %7, %c0_i32_2 : i32
    %15 = vector.broadcast %14 : i1 to vector<16x1xi1>
    %16 = vector.broadcast %15 : vector<16x1xi1> to vector<16x1xi1>
    %17 = arith.xori %13, %16 : vector<16x1xi1>
    %18 = arith.andi %17, %11 : vector<16x1xi1>
    %19 = vector.broadcast %7 : i32 to vector<16x1xi32>
    %20 = arith.addi %9, %19 : vector<16x1xi32>
    %21 = arith.select %18, %20, %9 : vector<16x1xi1>, vector<16x1xi32>
    %c1_i32_3 = arith.constant 1 : i32
    %22 = vector.broadcast %c1_i32_3 : i32 to vector<16x1xi32>
    %23 = arith.addi %21, %22 : vector<16x1xi32>
    %24 = arith.sitofp %23 : vector<16x1xi32> to vector<16x1xf32>
    %c0 = arith.constant 0 : index
    %c0_4 = arith.constant 0 : index
    %25 = vector.load %arg4[%c0, %c0_4] : memref<1x32xf32, #tpu.memory_space<vmem>>, vector<1x32xf32>
    %26 = vector.broadcast %24 : vector<16x1xf32> to vector<16x32xf32>
    %27 = vector.broadcast %25 : vector<1x32xf32> to vector<16x32xf32>
    %28 = arith.mulf %26, %27 : vector<16x32xf32>
    %29 = tpu.iota {dimensions = array<i32: 1>} : vector<16x32xi32>
    %c2_i32 = arith.constant 2 : i32
    %c0_i32_5 = arith.constant 0 : i32
    %30 = arith.cmpi eq, %c2_i32, %c0_i32_5 : i32
    %c1_i32_6 = arith.constant 1 : i32
    %31 = arith.select %30, %c1_i32_6, %c2_i32 : i32
    %32 = vector.broadcast %31 : i32 to vector<16x32xi32>
    %33 = arith.remsi %29, %32 : vector<16x32xi32>
    %c0_i32_7 = arith.constant 0 : i32
    %34 = vector.broadcast %c0_i32_7 : i32 to vector<16x32xi32>
    %35 = arith.cmpi ne, %33, %34 : vector<16x32xi32>
    %c0_i32_8 = arith.constant 0 : i32
    %36 = vector.broadcast %c0_i32_8 : i32 to vector<16x32xi32>
    %37 = arith.cmpi slt, %33, %36 : vector<16x32xi32>
    %c0_i32_9 = arith.constant 0 : i32
    %38 = arith.cmpi slt, %31, %c0_i32_9 : i32
    %39 = vector.broadcast %38 : i1 to vector<16x32xi1>
    %40 = vector.broadcast %39 : vector<16x32xi1> to vector<16x32xi1>
    %41 = arith.xori %37, %40 : vector<16x32xi1>
    %42 = arith.andi %41, %35 : vector<16x32xi1>
    %43 = vector.broadcast %31 : i32 to vector<16x32xi32>
    %44 = arith.addi %33, %43 : vector<16x32xi32>
    %45 = arith.select %42, %44, %33 : vector<16x32xi1>, vector<16x32xi32>
    %c0_i32_10 = arith.constant 0 : i32
    %46 = vector.broadcast %c0_i32_10 : i32 to vector<16x32xi32>
    %47 = arith.cmpi eq, %45, %46 : vector<16x32xi32>
    %cst = arith.constant 1.57079637 : f32
    %cst_11 = arith.constant 0.000000e+00 : f32
    %48 = vector.broadcast %cst : f32 to vector<16x32xf32>
    %49 = vector.broadcast %cst_11 : f32 to vector<16x32xf32>
    %50 = arith.select %47, %48, %49 : vector<16x32xi1>, vector<16x32xf32>
    %51 = arith.addf %28, %50 : vector<16x32xf32>
    %52 = math.sin %51 : vector<16x32xf32>
    %c0_12 = arith.constant 0 : index
    %c0_13 = arith.constant 0 : index
    %c0_14 = arith.constant 0 : index
    %53 = vector.load %arg3[%c0_12, %c0_13, %c0_14] : memref<1x16x32xf32, #tpu.memory_space<vmem>>, vector<1x16x32xf32>
    %54 = vector.shape_cast %52 : vector<16x32xf32> to vector<1x16x32xf32>
    %55 = arith.addf %53, %54 : vector<1x16x32xf32>
    %c0_15 = arith.constant 0 : index
    %c0_16 = arith.constant 0 : index
    %c0_17 = arith.constant 0 : index
    %56 = vector.load %arg5[%c0_15, %c0_16, %c0_17] : memref<1x16x32xf32, #tpu.memory_space<vmem>>, vector<1x16x32xf32>
    tpu.vector_store %arg5[%c0_15, %c0_16, %c0_17], %55 {strides = array<i32>} : memref<1x16x32xf32, #tpu.memory_space<vmem>>, vector<1x16x32xf32>,
    return
  }
  func.func @transform_0(%arg0: i32, %arg1: i32, %arg2: memref<2xi32, #tpu.memory_space<smem>>) -> (i32, i32, i32) {
    %c0_i32 = arith.constant 0 : i32
    %c0_i32_0 = arith.constant 0 : i32
    return %arg0, %arg1, %c0_i32 : i32, i32, i32
  }
  func.func @transform_1(%arg0: i32, %arg1: i32, %arg2: memref<2xi32, #tpu.memory_space<smem>>) -> (i32, i32) {
    %c0_i32 = arith.constant 0 : i32
    %c0_i32_0 = arith.constant 0 : i32
    %c0_i32_1 = arith.constant 0 : i32
    return %c0_i32, %c0_i32_0 : i32, i32
  }
  func.func @transform_2(%arg0: i32, %arg1: i32, %arg2: memref<2xi32, #tpu.memory_space<smem>>) -> (i32, i32, i32) {
    %c0_i32 = arith.constant 0 : i32
    %c0_i32_0 = arith.constant 0 : i32
    return %arg0, %arg1, %c0_i32 : i32, i32, i32
  }
}

</mosaic_0001>

<bundles_post_ra>
// kernel: tpu_custom_call.1
= control target key start
LH: loop header
LB: loop body
LE: loop exit
PB: predicated region body
PF: predicated region fallthrough
CT: control target
= control target key end

     0   :  { %s1846_s0 = inlined_call_operand.hbm [shape: s32[2], index: 0, kind: input, shape index: {}]   ;;  %s1847_s1 = inlined_call_operand.hbm [shape: f32[2,16,32], index: 1, kind: input, shape index: {}]   ;;  %s1848_s2 = inlined_call_operand.vmem [shape: f32[1,32], index: 2, kind: input, shape index: {}]   ;;  %s1849_s3 = inlined_call_operand.hbm [shape: f32[2,16,32], index: 3, kind: output, shape index: {}]  }
   0x1   :  { %s1273_s14 = scalar_lea.hbm %s1846_s0, 16 }
   0x2   :  { %p1274_p0 = scmp.ne.s32.totalorder %s1846_s0, %s1273_s14  ;;  %p1277_p1 = scmp.lt.u32.totalorder %s1273_s14, %s1846_s0 }
   0x4   :  { %p1279_p2 = pnand %p1277_p1, %p1274_p0 }
   0x6   :  { %1282 = shalt.err (!%p1279_p2)  }
   0x7   :  { %s1399_s19 = smov [#allocation3]  }
   0x8   :  { %9 = dma.hbm_to_smem %s1846_s0, 16, %s1399_s19, [#allocation2] }
   0x9   :  { %1365 = dma.done.wait [#allocation2], 16 }
   0xa   :  { %1366 = vsyncadd [#allocation2], 4294967280 }
   0xb   :  { %11 = sfence }
   0xc   :  { %12 = vsyncpa [#allocation5], 0 }
   0xd   :  { %14 = vsyncpa [#allocation5 + $0x1], 0 }
   0xe   :  { %15 = vsyncpa [#allocation6], 0 }
   0xf   :  { %17 = vsyncpa [#allocation6 + $0x1], 0  ;;  %s1445_s22 = smov 0   ;;  %s1447_s23 = smov 0  }
  0x10   :  { %s1449_s24 = smov 0   ;;  %s1451_s25 = smov 0  }
  0x11   :  { %s1453_s26 = smov 0   ;;  %s1455_s27 = smov 0  }
  0x12 LB: > { %s1155_s0 = sadd.s32 4294967295, %s1397_s27   ;;  %s1156_s28 = sadd.s32 4294967294, %s1397_s27   ;;  %s1397_s27 = sphi %s1455_s27, %s23_s27   ;;  %s1393_s26 = sphi %s1453_s26, %s1864_s26   ;;  %s1389_s25 = sphi %s1451_s25, %s1863_s25   ;;  %s1385_s24 = sphi %s1449_s24, %s1862_s24   ;;  %s1381_s23 = sphi %s1447_s23, %s1861_s23   ;;  %s1377_s22 = sphi %s1445_s22, %s1860_s22  }
  0x13   : > { %s35_s29 = sadd.s32 1, %s1393_s26  ;;  %s44_s30 = sadd.s32 1, %s1385_s24 }
  0x14   : > { %p37_p3 = scmp.ge.s32.totalorder %s35_s29, 2  ;;  %p51_p4 = scmp.ne.s32.totalorder %s1385_s24, %s1381_s23 }
  0x15   : > { %p52_p5 = scmp.eq.s32.totalorder %s1397_s27, 0  ;;  %p57_p6 = scmp.ne.s32.totalorder %s1381_s23, %s1377_s22 }
  0x16   : > { %s1866_s29 = smov (%p37_p3, %s35_s29), 0  ;;  %p58_p8 = scmp.eq.s32.totalorder %s1155_s0, 0 }
  0x17   : > { %p1486_p7 = por %p52_p5, %p51_p4  ;;  %s39_s5 = ssub.s32 %s1393_s26, %s1866_s29 }
  0x18   : > { %p104_p9 = scmp.eq.s32.totalorder %s1155_s0, 1  ;;  %p42_p10 = scmp.eq.s32.totalorder %s39_s5, 0 }
  0x19   : > { %p1492_p11 = por %p58_p8, %p57_p6  ;;  %p110_p13 = scmp.eq.s32.totalorder %s1156_s28, 1 }
  0x1a   : > { %p1496_p12 = por %p104_p9, %p51_p4  ;;  %p1203_p2 = scmp.lt.s32.totalorder %s1397_s27, 2 }
  0x1b   : > { %s1501_s8 = scalar_select %p42_p10, %s1385_s24, %s44_s30  }
  0x1c   : > { %s1853_s7 = scalar_select %p1496_p12, 1, 0 }
  0x1d   : > { %p1503_p0 = por %p110_p13, %p57_p6  ;;  %s133_s10 = sand.u32 1, %s1385_s24  }
  0x1e   : > { %s1159_s11 = sshll.u32 %s133_s10, 4  ;;  %s1181_s12 = sshll.u32 %s1393_s26, 8 }
  0x1f   : > { %s1854_s9 = scalar_select %p1503_p0, 1, 0 }
  0x20   : > { %s1514_s15 = scalar_lea.hbm %s1847_s1, %s1181_s12  ;;  %s137_s16 = scalar_lea.vmem [#allocation4], %s1159_s11 }
  0x21   : > { %s146_s17 = sshll.u32 %s137_s16, 4  ;;  %p1520_p3 = pnand %p1203_p2, %p1486_p7  ;;  %s1516_s17 = int_to_ptr.vmem [resolvable:$true] %s146_s17 }
  0x22   : > { %s1525_s19 = scalar_lea.sflag [#allocation5], %s133_s10  ;;  %s1283_s20 = scalar_lea.hbm %s1514_s15, 256 }
  0x23   : > { %p1284_p5 = scmp.ne.s32.totalorder %s1514_s15, %s1283_s20  ;;  %p1285_p6 = pneg %p1520_p3 }
  0x24   : > { %s1288_s28 = scalar_lea.hbm %s1847_s1, 512  ;;  %p1289_p7 = scmp.lt.u32.totalorder %s1514_s15, %s1847_s1 }
  0x25   : > { %p1286_p8 = pnand %p1285_p6, %p1284_p5  ;;  %p1290_p10 = scmp.lt.u32.totalorder %s1288_s28, %s1283_s20 }
  0x26   : > { %p1292_p2 = scmp.lt.u32.totalorder %s1283_s20, %s1514_s15 }
  0x27   : > { %p1287_p9 = pneg %p1286_p8  ;;  %p1291_p13 = por %p1290_p10, %p1289_p7 }
  0x29   : > { %p1293_p1 = por %p1292_p2, %p1291_p13 }
  0x2b   : > { %p1294_p4 = pnand %p1293_p1, %p1287_p9 }
  0x2d   : > { %1297 = shalt.err (!%p1294_p4)
}
  0x2e   : > { %s1298_s5 = scalar_lea.vmem %s1516_s17, 256  ;;  %s1400_s10 = smov [#allocation4]  }
  0x2f   : > { %p1299_p5 = scmp.ne.s32.totalorder %s1516_s17, %s1298_s5  ;;  %s1303_s11 = sshll.u32 %s1400_s10, 4  ;;  %s1304_s11 = int_to_ptr.vmem [resolvable:$false] %s1303_s11 }
  0x30   : > { %s1305_s12 = scalar_lea.vmem %s1304_s11, 512  ;;  %p1306_p12 = scmp.lt.s32.totalorder %s1516_s17, %s1304_s11 }
  0x31   : > { %p1301_p8 = pnand %p1299_p5, %p1285_p6  ;;  %p1307_p7 = scmp.lt.s32.totalorder %s1305_s12, %s1298_s5 }
  0x33   : > { %p1302_p0 = pneg %p1301_p8  ;;  %p1308_p10 = por %p1307_p7, %p1306_p12 }
  0x35   : > { %p1309_p13 = pnand %p1308_p10, %p1302_p0 }
  0x37   : > { %1312 = shalt.err (!%p1309_p13)
}
  0x38   : > { %s1401_s13 = smov 128   ;;  %s1402_s14 = smov 8  }
  0x39   : > { %1198 = dma.hbm_to_vmem [thread:$0]  (!%p1520_p3), %s1514_s15, 256, %s1516_s17, %s1525_s19, %s1401_s13, %s1401_s13, %s1402_s14  }
  0x3a   : > { %p154_p1 = scmp.lt.s32.totalorder %s1397_s27, 3  ;;  %p1856_p4 = scmp.ge.s32.totalorder %s1397_s27, 1 }
  0x3c   : > { %p155_p6 = pnand %p1856_p4, %p154_p1 }
  0x3d   : > { %s1557_s16 = sand.u32 (!%p155_p6), 1, %s1381_s23  }
  0x3e   : > { %158 = sbr.rel (%p155_p6) target bundleno = 423 (0x1a7), region = 28  ;;  %s1163_s20 = sshll.u32 (!%p155_p6), %s1557_s16, 4 }
  0x3f   : > { %s161_s21 = scalar_lea.sflag (!%p155_p6), [#allocation5], %s1557_s16  ;;  %s1563_s0 = scalar_lea.vmem (!%p155_p6), [#allocation4], %s1163_s20 }
  0x45   : > { %1368 = dma.done.wait (%p1492_p11), %s161_s21, 256  }
  0x46   : > { %1370 = vsyncadd (%p1492_p11), %s161_s21, 4294967040  ;;  %v188_v0 = vlaneseq  ;;  %s187_s15 = sld [smem:[#allocation3 + %s1389_s25]]  ;;  %s184_s19 = scalar_lea.vmem [#allocation7], %s1163_s20 }
  0x47   : > { %s1182_s28 = sshll.u32 %s1389_s25, 8  ;;  %s1068_s30 = sshll.u32 %s184_s19, 4  ;;  %s1796_s30 = int_to_ptr.vmem [resolvable:$true] %s1068_s30 }
  0x48   : > { %v189_v1 = vshrl.u32 %v188_v0, 7  ;;  %s1794_s10 = scalar_lea.hbm %s1849_s3, %s1182_s28  ;;  %s1053_s11 = scalar_lea.sflag [#allocation6], %s1557_s16 }
  0x49   : > { %s1313_s25 = scalar_lea.vmem %s1796_s30, 256  ;;  %p1857_p3 = scmp.ne.s32.totalorder %s1853_s7, 0 }
  0x4a   : > { %v190_v2 = vadd.s32 8, %v189_v1  ;;  %v207_v3 = vshll.u32 %v189_v1, 1  ;;  %v204_v7 = vshrl.u32 %v189_v1, 31  ;;  %p1314_p0 = scmp.ne.s32.totalorder %s1796_s30, %s1313_s25  ;;  %s1410_s12 = smov [#allocation7]  }
  0x4b   : > { %s1317_s13 = sshll.u32 %s1410_s12, 4  ;;  %s1318_s13 = int_to_ptr.vmem [resolvable:$false] %s1317_s13 }
  0x4c   : > { %p195_p12 = scmp.eq.s32.totalorder %s187_s15, 0  ;;  %v503_v4 = vshll.u32 %v190_v2, 1  ;;  %v500_v8 = vshrl.u32 %v190_v2, 31  ;;  %v211_v9 = vadd.s32 1, %v207_v3  ;;  %p1315_p9 = pnand %p1314_p0, %p1857_p3 }
  0x4d   : > { %s1319_s14 = scalar_lea.vmem %s1318_s13, 512  ;;  %p1320_p5 = scmp.lt.s32.totalorder %s1796_s30, %s1318_s13 }
  0x4e   : > { %s1868_s15 = smov (%p195_p12, %s187_s15), 1  ;;  %v507_v10 = vadd.s32 1, %v503_v4  ;;  %p1316_p2 = pneg %p1315_p9 }
  0x4f   : > { %v1574_v5 = vstv %s1868_s15  ;;  %p794_p11 = scmp.lt.s32.totalorder %s1868_s15, 0  ;;  %p1321_p8 = scmp.lt.s32.totalorder %s1319_s14, %s1313_s25 }
  0x50   : > { %v202_v6 = vsub.s32 0, %v1574_v5 }
  0x51   : > { %s795_s6 = scalar_select %p794_p11, 1, 0 }
  0x52   : > { %v1578_v11 = vmin.u32 %v202_v6, %v1574_v5  ;;  %p1322_p7 = por %p1321_p8, %p1320_p5 }
  0x54   : > { %vm208_vm0 = vcmp.ge.u32.totalorder %v204_v7, %v1578_v11  ;;  %v209_v12 = vsub.s32 %v204_v7, %v1578_v11  ;;  %vm504_vm1 = vcmp.ge.u32.totalorder %v500_v8, %v1578_v11  ;;  %v505_v13 = vsub.s32 %v500_v8, %v1578_v11  ;;  %p1323_p10 = pnand %p1322_p7, %p1316_p2 }
  0x55   : > { %v212_v14 = vsel %vm208_vm0, %v211_v9, %v207_v3  ;;  %v508_v15 = vsel %vm504_vm1, %v507_v10, %v503_v4 }
  0x56   : > { %v210_v16 = vsel %vm208_vm0, %v209_v12, %v204_v7  ;;  %v213_v17 = vshrl.u32 %v212_v14, 31  ;;  %v216_v18 = vshll.u32 %v212_v14, 1  ;;  %v506_v19 = vsel %vm504_vm1, %v505_v13, %v500_v8 }
  0x57   : > { %v214_v20 = vshll.u32 %v210_v16, 1  ;;  %v509_v21 = vshrl.u32 %v508_v15, 31  ;;  %v510_v22 = vshll.u32 %v506_v19, 1  ;;  %v512_v23 = vshll.u32 %v508_v15, 1 }
  0x58   : > { %v220_v24 = vadd.s32 1, %v216_v18 }
  0x59   : > { %v215_v25 = vor.u32 %v214_v20, %v213_v17  ;;  %v511_v26 = vor.u32 %v510_v22, %v509_v21  ;;  %v516_v27 = vadd.s32 1, %v512_v23 }
  0x5b   : > { %vm217_vm2 = vcmp.ge.u32.totalorder %v215_v25, %v1578_v11  ;;  %v218_v28 = vsub.s32 %v215_v25, %v1578_v11  ;;  %vm513_vm3 = vcmp.ge.u32.totalorder %v511_v26, %v1578_v11  ;;  %v514_v29 = vsub.s32 %v511_v26, %v1578_v11 }
  0x5c   : > { %v221_v30 = vsel %vm217_vm2, %v220_v24, %v216_v18  ;;  %v517_v31 = vsel %vm513_vm3, %v516_v27, %v512_v23 }
  0x5d   : > { %v219_v32 = vsel %vm217_vm2, %v218_v28, %v215_v25  ;;  %v222_v33 = vshrl.u32 %v221_v30, 31  ;;  %v225_v34 = vshll.u32 %v221_v30, 1  ;;  %v515_v35 = vsel %vm513_vm3, %v514_v29, %v511_v26 }
  0x5e   : > { %v223_v36 = vshll.u32 %v219_v32, 1  ;;  %v518_v37 = vshrl.u32 %v517_v31, 31  ;;  %v519_v38 = vshll.u32 %v515_v35, 1  ;;  %v521_v39 = vshll.u32 %v517_v31, 1 }
  0x5f   : > { %v229_v40 = vadd.s32 1, %v225_v34 }
  0x60   : > { %v224_v41 = vor.u32 %v223_v36, %v222_v33  ;;  %v520_v42 = vor.u32 %v519_v38, %v518_v37  ;;  %v525_v43 = vadd.s32 1, %v521_v39 }
  0x62   : > { %vm226_vm4 = vcmp.ge.u32.totalorder %v224_v41, %v1578_v11  ;;  %v227_v44 = vsub.s32 %v224_v41, %v1578_v11  ;;  %vm522_vm5 = vcmp.ge.u32.totalorder %v520_v42, %v1578_v11  ;;  %v523_v45 = vsub.s32 %v520_v42, %v1578_v11 }
  0x63   : > { %v230_v46 = vsel %vm226_vm4, %v229_v40, %v225_v34  ;;  %v526_v47 = vsel %vm522_vm5, %v525_v43, %v521_v39 }
  0x64   : > { %v228_v48 = vsel %vm226_vm4, %v227_v44, %v224_v41  ;;  %v231_v49 = vshrl.u32 %v230_v46, 31  ;;  %v234_v50 = vshll.u32 %v230_v46, 1  ;;  %v524_v51 = vsel %vm522_vm5, %v523_v45, %v520_v42 }
  0x65   : > { %v232_v52 = vshll.u32 %v228_v48, 1  ;;  %v527_v53 = vshrl.u32 %v526_v47, 31  ;;  %v528_v54 = vshll.u32 %v524_v51, 1  ;;  %v530_v55 = vshll.u32 %v526_v47, 1 }
  0x66   : > { %v238_v56 = vadd.s32 1, %v234_v50 }
  0x67   : > { %v233_v57 = vor.u32 %v232_v52, %v231_v49  ;;  %v529_v58 = vor.u32 %v528_v54, %v527_v53  ;;  %v534_v59 = vadd.s32 1, %v530_v55 }
  0x69   : > { %vm235_vm6 = vcmp.ge.u32.totalorder %v233_v57, %v1578_v11  ;;  %v236_v60 = vsub.s32 %v233_v57, %v1578_v11  ;;  %vm531_vm7 = vcmp.ge.u32.totalorder %v529_v58, %v1578_v11  ;;  %v532_v61 = vsub.s32 %v529_v58, %v1578_v11 }
  0x6a   : > { %v239_v62 = vsel %vm235_vm6, %v238_v56, %v234_v50  ;;  %v535_v63 = vsel %vm531_vm7, %v534_v59, %v530_v55 }
  0x6b   : > { %v237_v1 = vsel %vm235_vm6, %v236_v60, %v233_v57  ;;  %v240_v2 = vshrl.u32 %v239_v62, 31  ;;  %v243_v3 = vshll.u32 %v239_v62, 1  ;;  %v533_v4 = vsel %vm531_vm7, %v532_v61, %v529_v58 }
  0x6c   : > { %v241_v6 = vshll.u32 %v237_v1, 1  ;;  %v536_v7 = vshrl.u32 %v535_v63, 31  ;;  %v537_v8 = vshll.u32 %v533_v4, 1  ;;  %v539_v9 = vshll.u32 %v535_v63, 1 }
  0x6d   : > { %v247_v10 = vadd.s32 1, %v243_v3 }
  0x6e   : > { %v242_v12 = vor.u32 %v241_v6, %v240_v2  ;;  %v538_v13 = vor.u32 %v537_v8, %v536_v7  ;;  %v543_v14 = vadd.s32 1, %v539_v9 }
  0x70   : > { %vm244_vm8 = vcmp.ge.u32.totalorder %v242_v12, %v1578_v11  ;;  %v245_v15 = vsub.s32 %v242_v12, %v1578_v11  ;;  %vm540_vm9 = vcmp.ge.u32.totalorder %v538_v13, %v1578_v11  ;;  %v541_v16 = vsub.s32 %v538_v13, %v1578_v11 }
  0x71   : > { %v248_v17 = vsel %vm244_vm8, %v247_v10, %v243_v3  ;;  %v544_v18 = vsel %vm540_vm9, %v543_v14, %v539_v9 }
  0x72   : > { %v246_v19 = vsel %vm244_vm8, %v245_v15, %v242_v12  ;;  %v249_v20 = vshrl.u32 %v248_v17, 31  ;;  %v252_v21 = vshll.u32 %v248_v17, 1  ;;  %v542_v22 = vsel %vm540_vm9, %v541_v16, %v538_v13 }
  0x73   : > { %v250_v23 = vshll.u32 %v246_v19, 1  ;;  %v545_v24 = vshrl.u32 %v544_v18, 31  ;;  %v546_v25 = vshll.u32 %v542_v22, 1  ;;  %v548_v26 = vshll.u32 %v544_v18, 1 }
  0x74   : > { %v256_v27 = vadd.s32 1, %v252_v21 }
  0x75   : > { %v251_v28 = vor.u32 %v250_v23, %v249_v20  ;;  %v547_v29 = vor.u32 %v546_v25, %v545_v24  ;;  %v552_v30 = vadd.s32 1, %v548_v26 }
  0x77   : > { %vm253_vm10 = vcmp.ge.u32.totalorder %v251_v28, %v1578_v11  ;;  %v254_v31 = vsub.s32 %v251_v28, %v1578_v11  ;;  %vm549_vm11 = vcmp.ge.u32.totalorder %v547_v29, %v1578_v11  ;;  %v550_v32 = vsub.s32 %v547_v29, %v1578_v11 }
  0x78   : > { %v257_v33 = vsel %vm253_vm10, %v256_v27, %v252_v21  ;;  %v553_v34 = vsel %vm549_vm11, %v552_v30, %v548_v26 }
  0x79   : > { %v255_v35 = vsel %vm253_vm10, %v254_v31, %v251_v28  ;;  %v258_v36 = vshrl.u32 %v257_v33, 31  ;;  %v261_v37 = vshll.u32 %v257_v33, 1  ;;  %v551_v38 = vsel %vm549_vm11, %v550_v32, %v547_v29 }
  0x7a   : > { %v259_v39 = vshll.u32 %v255_v35, 1  ;;  %v554_v40 = vshrl.u32 %v553_v34, 31  ;;  %v555_v41 = vshll.u32 %v551_v38, 1  ;;  %v557_v42 = vshll.u32 %v553_v34, 1 }
  0x7b   : > { %v265_v43 = vadd.s32 1, %v261_v37 }
  0x7c   : > { %v260_v44 = vor.u32 %v259_v39, %v258_v36  ;;  %v556_v45 = vor.u32 %v555_v41, %v554_v40  ;;  %v561_v46 = vadd.s32 1, %v557_v42 }
  0x7e   : > { %vm262_vm12 = vcmp.ge.u32.totalorder %v260_v44, %v1578_v11  ;;  %v263_v47 = vsub.s32 %v260_v44, %v1578_v11  ;;  %vm558_vm13 = vcmp.ge.u32.totalorder %v556_v45, %v1578_v11  ;;  %v559_v48 = vsub.s32 %v556_v45, %v1578_v11 }
  0x7f   : > { %v266_v49 = vsel %vm262_vm12, %v265_v43, %v261_v37  ;;  %v562_v50 = vsel %vm558_vm13, %v561_v46, %v557_v42 }
  0x80   : > { %v264_v51 = vsel %vm262_vm12, %v263_v47, %v260_v44  ;;  %v267_v52 = vshrl.u32 %v266_v49, 31  ;;  %v270_v53 = vshll.u32 %v266_v49, 1  ;;  %v560_v54 = vsel %vm558_vm13, %v559_v48, %v556_v45 }
  0x81   : > { %v268_v55 = vshll.u32 %v264_v51, 1  ;;  %v563_v56 = vshrl.u32 %v562_v50, 31  ;;  %v564_v57 = vshll.u32 %v560_v54, 1  ;;  %v566_v58 = vshll.u32 %v562_v50, 1 }
  0x82   : > { %v274_v59 = vadd.s32 1, %v270_v53 }
  0x83   : > { %v269_v60 = vor.u32 %v268_v55, %v267_v52  ;;  %v565_v61 = vor.u32 %v564_v57, %v563_v56  ;;  %v570_v62 = vadd.s32 1, %v566_v58 }
  0x85   : > { %vm271_vm14 = vcmp.ge.u32.totalorder %v269_v60, %v1578_v11  ;;  %v272_v63 = vsub.s32 %v269_v60, %v1578_v11  ;;  %vm567_vm15 = vcmp.ge.u32.totalorder %v565_v61, %v1578_v11  ;;  %v568_v1 = vsub.s32 %v565_v61, %v1578_v11 }
  0x86   : > { %v275_v2 = vsel %vm271_vm14, %v274_v59, %v270_v53  ;;  %v571_v3 = vsel %vm567_vm15, %v570_v62, %v566_v58 }
  0x87   : > { %v273_v4 = vsel %vm271_vm14, %v272_v63, %v269_v60  ;;  %v276_v6 = vshrl.u32 %v275_v2, 31  ;;  %v279_v7 = vshll.u32 %v275_v2, 1  ;;  %v569_v8 = vsel %vm567_vm15, %v568_v1, %v565_v61 }
  0x88   : > { %v277_v9 = vshll.u32 %v273_v4, 1  ;;  %v572_v10 = vshrl.u32 %v571_v3, 31  ;;  %v573_v12 = vshll.u32 %v569_v8, 1  ;;  %v575_v13 = vshll.u32 %v571_v3, 1 }
  0x89   : > { %v283_v14 = vadd.s32 1, %v279_v7 }
  0x8a   : > { %v278_v15 = vor.u32 %v277_v9, %v276_v6  ;;  %v574_v16 = vor.u32 %v573_v12, %v572_v10  ;;  %v579_v17 = vadd.s32 1, %v575_v13 }
  0x8c   : > { %vm280_vm0 = vcmp.ge.u32.totalorder %v278_v15, %v1578_v11  ;;  %v281_v18 = vsub.s32 %v278_v15, %v1578_v11  ;;  %vm576_vm1 = vcmp.ge.u32.totalorder %v574_v16, %v1578_v11  ;;  %v577_v19 = vsub.s32 %v574_v16, %v1578_v11 }
  0x8d   : > { %v284_v20 = vsel %vm280_vm0, %v283_v14, %v279_v7  ;;  %v580_v21 = vsel %vm576_vm1, %v579_v17, %v575_v13 }
  0x8e   : > { %v282_v22 = vsel %vm280_vm0, %v281_v18, %v278_v15  ;;  %v285_v23 = vshrl.u32 %v284_v20, 31  ;;  %v288_v24 = vshll.u32 %v284_v20, 1  ;;  %v578_v25 = vsel %vm576_vm1, %v577_v19, %v574_v16 }
  0x8f   : > { %v286_v26 = vshll.u32 %v282_v22, 1  ;;  %v581_v27 = vshrl.u32 %v580_v21, 31  ;;  %v582_v28 = vshll.u32 %v578_v25, 1  ;;  %v584_v29 = vshll.u32 %v580_v21, 1 }
  0x90   : > { %v292_v30 = vadd.s32 1, %v288_v24 }
  0x91   : > { %v287_v31 = vor.u32 %v286_v26, %v285_v23  ;;  %v583_v32 = vor.u32 %v582_v28, %v581_v27  ;;  %v588_v33 = vadd.s32 1, %v584_v29 }
  0x93   : > { %vm289_vm2 = vcmp.ge.u32.totalorder %v287_v31, %v1578_v11  ;;  %v290_v34 = vsub.s32 %v287_v31, %v1578_v11  ;;  %vm585_vm3 = vcmp.ge.u32.totalorder %v583_v32, %v1578_v11  ;;  %v586_v35 = vsub.s32 %v583_v32, %v1578_v11 }
  0x94   : > { %v293_v36 = vsel %vm289_vm2, %v292_v30, %v288_v24  ;;  %v589_v37 = vsel %vm585_vm3, %v588_v33, %v584_v29 }
  0x95   : > { %v291_v38 = vsel %vm289_vm2, %v290_v34, %v287_v31  ;;  %v294_v39 = vshrl.u32 %v293_v36, 31  ;;  %v297_v40 = vshll.u32 %v293_v36, 1  ;;  %v587_v41 = vsel %vm585_vm3, %v586_v35, %v583_v32 }
  0x96   : > { %v295_v42 = vshll.u32 %v291_v38, 1  ;;  %v590_v43 = vshrl.u32 %v589_v37, 31  ;;  %v591_v44 = vshll.u32 %v587_v41, 1  ;;  %v593_v45 = vshll.u32 %v589_v37, 1 }
  0x97   : > { %v301_v46 = vadd.s32 1, %v297_v40 }
  0x98   : > { %v296_v47 = vor.u32 %v295_v42, %v294_v39  ;;  %v592_v48 = vor.u32 %v591_v44, %v590_v43  ;;  %v597_v49 = vadd.s32 1, %v593_v45 }
  0x9a   : > { %vm298_vm4 = vcmp.ge.u32.totalorder %v296_v47, %v1578_v11  ;;  %v299_v50 = vsub.s32 %v296_v47, %v1578_v11  ;;  %vm594_vm5 = vcmp.ge.u32.totalorder %v592_v48, %v1578_v11  ;;  %v595_v51 = vsub.s32 %v592_v48, %v1578_v11 }
  0x9b   : > { %v302_v52 = vsel %vm298_vm4, %v301_v46, %v297_v40  ;;  %v598_v53 = vsel %vm594_vm5, %v597_v49, %v593_v45 }
  0x9c   : > { %v300_v54 = vsel %vm298_vm4, %v299_v50, %v296_v47  ;;  %v303_v55 = vshrl.u32 %v302_v52, 31  ;;  %v306_v56 = vshll.u32 %v302_v52, 1  ;;  %v596_v57 = vsel %vm594_vm5, %v595_v51, %v592_v48 }
  0x9d   : > { %v304_v58 = vshll.u32 %v300_v54, 1  ;;  %v599_v59 = vshrl.u32 %v598_v53, 31  ;;  %v600_v60 = vshll.u32 %v596_v57, 1  ;;  %v602_v61 = vshll.u32 %v598_v53, 1 }
  0x9e   : > { %v310_v62 = vadd.s32 1, %v306_v56 }
  0x9f   : > { %v305_v63 = vor.u32 %v304_v58, %v303_v55  ;;  %v601_v1 = vor.u32 %v600_v60, %v599_v59  ;;  %v606_v2 = vadd.s32 1, %v602_v61 }
  0xa1   : > { %vm307_vm6 = vcmp.ge.u32.totalorder %v305_v63, %v1578_v11  ;;  %v308_v3 = vsub.s32 %v305_v63, %v1578_v11  ;;  %vm603_vm7 = vcmp.ge.u32.totalorder %v601_v1, %v1578_v11  ;;  %v604_v4 = vsub.s32 %v601_v1, %v1578_v11 }
  0xa2   : > { %v311_v6 = vsel %vm307_vm6, %v310_v62, %v306_v56  ;;  %v607_v7 = vsel %vm603_vm7, %v606_v2, %v602_v61 }
  0xa3   : > { %v309_v8 = vsel %vm307_vm6, %v308_v3, %v305_v63  ;;  %v312_v9 = vshrl.u32 %v311_v6, 31  ;;  %v315_v10 = vshll.u32 %v311_v6, 1  ;;  %v605_v12 = vsel %vm603_vm7, %v604_v4, %v601_v1 }
  0xa4   : > { %v313_v13 = vshll.u32 %v309_v8, 1  ;;  %v608_v14 = vshrl.u32 %v607_v7, 31  ;;  %v609_v15 = vshll.u32 %v605_v12, 1  ;;  %v611_v16 = vshll.u32 %v607_v7, 1 }
  0xa5   : > { %v319_v17 = vadd.s32 1, %v315_v10 }
  0xa6   : > { %v314_v18 = vor.u32 %v313_v13, %v312_v9  ;;  %v610_v19 = vor.u32 %v609_v15, %v608_v14  ;;  %v615_v20 = vadd.s32 1, %v611_v16 }
  0xa8   : > { %vm316_vm8 = vcmp.ge.u32.totalorder %v314_v18, %v1578_v11  ;;  %v317_v21 = vsub.s32 %v314_v18, %v1578_v11  ;;  %vm612_vm9 = vcmp.ge.u32.totalorder %v610_v19, %v1578_v11  ;;  %v613_v22 = vsub.s32 %v610_v19, %v1578_v11 }
  0xa9   : > { %v320_v23 = vsel %vm316_vm8, %v319_v17, %v315_v10  ;;  %v616_v24 = vsel %vm612_vm9, %v615_v20, %v611_v16 }
  0xaa   : > { %v318_v25 = vsel %vm316_vm8, %v317_v21, %v314_v18  ;;  %v321_v26 = vshrl.u32 %v320_v23, 31  ;;  %v324_v27 = vshll.u32 %v320_v23, 1  ;;  %v614_v28 = vsel %vm612_vm9, %v613_v22, %v610_v19 }
  0xab   : > { %v322_v29 = vshll.u32 %v318_v25, 1  ;;  %v617_v30 = vshrl.u32 %v616_v24, 31  ;;  %v618_v31 = vshll.u32 %v614_v28, 1  ;;  %v620_v32 = vshll.u32 %v616_v24, 1 }
  0xac   : > { %v328_v33 = vadd.s32 1, %v324_v27 }
  0xad   : > { %v323_v34 = vor.u32 %v322_v29, %v321_v26  ;;  %v619_v35 = vor.u32 %v618_v31, %v617_v30  ;;  %v624_v36 = vadd.s32 1, %v620_v32 }
  0xaf   : > { %vm325_vm10 = vcmp.ge.u32.totalorder %v323_v34, %v1578_v11  ;;  %v326_v37 = vsub.s32 %v323_v34, %v1578_v11  ;;  %vm621_vm11 = vcmp.ge.u32.totalorder %v619_v35, %v1578_v11  ;;  %v622_v38 = vsub.s32 %v619_v35, %v1578_v11 }
  0xb0   : > { %v329_v39 = vsel %vm325_vm10, %v328_v33, %v324_v27  ;;  %v625_v40 = vsel %vm621_vm11, %v624_v36, %v620_v32 }
  0xb1   : > { %v327_v41 = vsel %vm325_vm10, %v326_v37, %v323_v34  ;;  %v330_v42 = vshrl.u32 %v329_v39, 31  ;;  %v333_v43 = vshll.u32 %v329_v39, 1  ;;  %v623_v44 = vsel %vm621_vm11, %v622_v38, %v619_v35 }
  0xb2   : > { %v331_v45 = vshll.u32 %v327_v41, 1  ;;  %v626_v46 = vshrl.u32 %v625_v40, 31  ;;  %v627_v47 = vshll.u32 %v623_v44, 1  ;;  %v629_v48 = vshll.u32 %v625_v40, 1 }
  0xb3   : > { %v337_v49 = vadd.s32 1, %v333_v43 }
  0xb4   : > { %v332_v50 = vor.u32 %v331_v45, %v330_v42  ;;  %v628_v51 = vor.u32 %v627_v47, %v626_v46  ;;  %v633_v52 = vadd.s32 1, %v629_v48 }
  0xb6   : > { %vm334_vm12 = vcmp.ge.u32.totalorder %v332_v50, %v1578_v11  ;;  %v335_v53 = vsub.s32 %v332_v50, %v1578_v11  ;;  %vm630_vm13 = vcmp.ge.u32.totalorder %v628_v51, %v1578_v11  ;;  %v631_v54 = vsub.s32 %v628_v51, %v1578_v11 }
  0xb7   : > { %v338_v55 = vsel %vm334_vm12, %v337_v49, %v333_v43  ;;  %v634_v56 = vsel %vm630_vm13, %v633_v52, %v629_v48 }
  0xb8   : > { %v336_v57 = vsel %vm334_vm12, %v335_v53, %v332_v50  ;;  %v339_v58 = vshrl.u32 %v338_v55, 31  ;;  %v342_v59 = vshll.u32 %v338_v55, 1  ;;  %v632_v60 = vsel %vm630_vm13, %v631_v54, %v628_v51 }
  0xb9   : > { %v340_v61 = vshll.u32 %v336_v57, 1  ;;  %v635_v62 = vshrl.u32 %v634_v56, 31  ;;  %v636_v63 = vshll.u32 %v632_v60, 1  ;;  %v638_v1 = vshll.u32 %v634_v56, 1 }
  0xba   : > { %v346_v2 = vadd.s32 1, %v342_v59 }
  0xbb   : > { %v341_v3 = vor.u32 %v340_v61, %v339_v58  ;;  %v637_v4 = vor.u32 %v636_v63, %v635_v62  ;;  %v642_v6 = vadd.s32 1, %v638_v1 }
  0xbd   : > { %vm343_vm14 = vcmp.ge.u32.totalorder %v341_v3, %v1578_v11  ;;  %v344_v7 = vsub.s32 %v341_v3, %v1578_v11  ;;  %vm639_vm15 = vcmp.ge.u32.totalorder %v637_v4, %v1578_v11  ;;  %v640_v8 = vsub.s32 %v637_v4, %v1578_v11 }
  0xbe   : > { %v347_v9 = vsel %vm343_vm14, %v346_v2, %v342_v59  ;;  %v643_v10 = vsel %vm639_vm15, %v642_v6, %v638_v1 }
  0xbf   : > { %v345_v12 = vsel %vm343_vm14, %v344_v7, %v341_v3  ;;  %v348_v13 = vshrl.u32 %v347_v9, 31  ;;  %v351_v14 = vshll.u32 %v347_v9, 1  ;;  %v641_v15 = vsel %vm639_vm15, %v640_v8, %v637_v4 }
  0xc0   : > { %v349_v16 = vshll.u32 %v345_v12, 1  ;;  %v644_v17 = vshrl.u32 %v643_v10, 31  ;;  %v645_v18 = vshll.u32 %v641_v15, 1  ;;  %v647_v19 = vshll.u32 %v643_v10, 1 }
  0xc1   : > { %v355_v20 = vadd.s32 1, %v351_v14 }
  0xc2   : > { %v350_v21 = vor.u32 %v349_v16, %v348_v13  ;;  %v646_v22 = vor.u32 %v645_v18, %v644_v17  ;;  %v651_v23 = vadd.s32 1, %v647_v19 }
  0xc4   : > { %vm352_vm0 = vcmp.ge.u32.totalorder %v350_v21, %v1578_v11  ;;  %v353_v24 = vsub.s32 %v350_v21, %v1578_v11  ;;  %vm648_vm1 = vcmp.ge.u32.totalorder %v646_v22, %v1578_v11  ;;  %v649_v25 = vsub.s32 %v646_v22, %v1578_v11 }
  0xc5   : > { %v356_v26 = vsel %vm352_vm0, %v355_v20, %v351_v14  ;;  %v652_v27 = vsel %vm648_vm1, %v651_v23, %v647_v19 }
  0xc6   : > { %v354_v28 = vsel %vm352_vm0, %v353_v24, %v350_v21  ;;  %v357_v29 = vshrl.u32 %v356_v26, 31  ;;  %v360_v30 = vshll.u32 %v356_v26, 1  ;;  %v650_v31 = vsel %vm648_vm1, %v649_v25, %v646_v22 }
  0xc7   : > { %v358_v32 = vshll.u32 %v354_v28, 1  ;;  %v653_v33 = vshrl.u32 %v652_v27, 31  ;;  %v654_v34 = vshll.u32 %v650_v31, 1  ;;  %v656_v35 = vshll.u32 %v652_v27, 1 }
  0xc8   : > { %v364_v36 = vadd.s32 1, %v360_v30 }
  0xc9   : > { %v359_v37 = vor.u32 %v358_v32, %v357_v29  ;;  %v655_v38 = vor.u32 %v654_v34, %v653_v33  ;;  %v660_v39 = vadd.s32 1, %v656_v35 }
  0xcb   : > { %vm361_vm2 = vcmp.ge.u32.totalorder %v359_v37, %v1578_v11  ;;  %v362_v40 = vsub.s32 %v359_v37, %v1578_v11  ;;  %vm657_vm3 = vcmp.ge.u32.totalorder %v655_v38, %v1578_v11  ;;  %v658_v41 = vsub.s32 %v655_v38, %v1578_v11 }
  0xcc   : > { %v365_v42 = vsel %vm361_vm2, %v364_v36, %v360_v30  ;;  %v661_v43 = vsel %vm657_vm3, %v660_v39, %v656_v35 }
  0xcd   : > { %v363_v44 = vsel %vm361_vm2, %v362_v40, %v359_v37  ;;  %v366_v45 = vshrl.u32 %v365_v42, 31  ;;  %v369_v46 = vshll.u32 %v365_v42, 1  ;;  %v659_v47 = vsel %vm657_vm3, %v658_v41, %v655_v38 }
  0xce   : > { %v367_v48 = vshll.u32 %v363_v44, 1  ;;  %v662_v49 = vshrl.u32 %v661_v43, 31  ;;  %v663_v50 = vshll.u32 %v659_v47, 1  ;;  %v665_v51 = vshll.u32 %v661_v43, 1 }
  0xcf   : > { %v373_v52 = vadd.s32 1, %v369_v46 }
  0xd0   : > { %v368_v53 = vor.u32 %v367_v48, %v366_v45  ;;  %v664_v54 = vor.u32 %v663_v50, %v662_v49  ;;  %v669_v55 = vadd.s32 1, %v665_v51 }
  0xd2   : > { %vm370_vm4 = vcmp.ge.u32.totalorder %v368_v53, %v1578_v11  ;;  %v371_v56 = vsub.s32 %v368_v53, %v1578_v11  ;;  %vm666_vm5 = vcmp.ge.u32.totalorder %v664_v54, %v1578_v11  ;;  %v667_v57 = vsub.s32 %v664_v54, %v1578_v11 }
  0xd3   : > { %v374_v58 = vsel %vm370_vm4, %v373_v52, %v369_v46  ;;  %v670_v59 = vsel %vm666_vm5, %v669_v55, %v665_v51 }
  0xd4   : > { %v372_v60 = vsel %vm370_vm4, %v371_v56, %v368_v53  ;;  %v375_v61 = vshrl.u32 %v374_v58, 31  ;;  %v378_v62 = vshll.u32 %v374_v58, 1  ;;  %v668_v63 = vsel %vm666_vm5, %v667_v57, %v664_v54 }
  0xd5   : > { %v376_v1 = vshll.u32 %v372_v60, 1  ;;  %v671_v2 = vshrl.u32 %v670_v59, 31  ;;  %v672_v3 = vshll.u32 %v668_v63, 1  ;;  %v674_v4 = vshll.u32 %v670_v59, 1 }
  0xd6   : > { %v382_v6 = vadd.s32 1, %v378_v62 }
  0xd7   : > { %v377_v7 = vor.u32 %v376_v1, %v375_v61  ;;  %v673_v8 = vor.u32 %v672_v3, %v671_v2  ;;  %v678_v9 = vadd.s32 1, %v674_v4 }
  0xd9   : > { %vm379_vm6 = vcmp.ge.u32.totalorder %v377_v7, %v1578_v11  ;;  %v380_v10 = vsub.s32 %v377_v7, %v1578_v11  ;;  %vm675_vm7 = vcmp.ge.u32.totalorder %v673_v8, %v1578_v11  ;;  %v676_v12 = vsub.s32 %v673_v8, %v1578_v11 }
  0xda   : > { %v383_v13 = vsel %vm379_vm6, %v382_v6, %v378_v62  ;;  %v679_v14 = vsel %vm675_vm7, %v678_v9, %v674_v4 }
  0xdb   : > { %v381_v15 = vsel %vm379_vm6, %v380_v10, %v377_v7  ;;  %v384_v16 = vshrl.u32 %v383_v13, 31  ;;  %v387_v17 = vshll.u32 %v383_v13, 1  ;;  %v677_v18 = vsel %vm675_vm7, %v676_v12, %v673_v8 }
  0xdc   : > { %v385_v19 = vshll.u32 %v381_v15, 1  ;;  %v680_v20 = vshrl.u32 %v679_v14, 31  ;;  %v681_v21 = vshll.u32 %v677_v18, 1  ;;  %v683_v22 = vshll.u32 %v679_v14, 1 }
  0xdd   : > { %v391_v23 = vadd.s32 1, %v387_v17 }
  0xde   : > { %v386_v24 = vor.u32 %v385_v19, %v384_v16  ;;  %v682_v25 = vor.u32 %v681_v21, %v680_v20  ;;  %v687_v26 = vadd.s32 1, %v683_v22 }
  0xe0   : > { %vm388_vm8 = vcmp.ge.u32.totalorder %v386_v24, %v1578_v11  ;;  %v389_v27 = vsub.s32 %v386_v24, %v1578_v11  ;;  %vm684_vm9 = vcmp.ge.u32.totalorder %v682_v25, %v1578_v11  ;;  %v685_v28 = vsub.s32 %v682_v25, %v1578_v11 }
  0xe1   : > { %v392_v29 = vsel %vm388_vm8, %v391_v23, %v387_v17  ;;  %v688_v30 = vsel %vm684_vm9, %v687_v26, %v683_v22 }
  0xe2   : > { %v390_v31 = vsel %vm388_vm8, %v389_v27, %v386_v24  ;;  %v393_v32 = vshrl.u32 %v392_v29, 31  ;;  %v396_v33 = vshll.u32 %v392_v29, 1  ;;  %v686_v34 = vsel %vm684_vm9, %v685_v28, %v682_v25 }
  0xe3   : > { %v394_v35 = vshll.u32 %v390_v31, 1  ;;  %v689_v36 = vshrl.u32 %v688_v30, 31  ;;  %v690_v37 = vshll.u32 %v686_v34, 1  ;;  %v692_v38 = vshll.u32 %v688_v30, 1 }
  0xe4   : > { %v400_v39 = vadd.s32 1, %v396_v33 }
  0xe5   : > { %v395_v40 = vor.u32 %v394_v35, %v393_v32  ;;  %v691_v41 = vor.u32 %v690_v37, %v689_v36  ;;  %v696_v42 = vadd.s32 1, %v692_v38 }
  0xe7   : > { %vm397_vm10 = vcmp.ge.u32.totalorder %v395_v40, %v1578_v11  ;;  %v398_v43 = vsub.s32 %v395_v40, %v1578_v11  ;;  %vm693_vm11 = vcmp.ge.u32.totalorder %v691_v41, %v1578_v11  ;;  %v694_v44 = vsub.s32 %v691_v41, %v1578_v11 }
  0xe8   : > { %v401_v45 = vsel %vm397_vm10, %v400_v39, %v396_v33  ;;  %v697_v46 = vsel %vm693_vm11, %v696_v42, %v692_v38 }
  0xe9   : > { %v399_v47 = vsel %vm397_vm10, %v398_v43, %v395_v40  ;;  %v402_v48 = vshrl.u32 %v401_v45, 31  ;;  %v405_v49 = vshll.u32 %v401_v45, 1  ;;  %v695_v50 = vsel %vm693_vm11, %v694_v44, %v691_v41 }
  0xea   : > { %v403_v51 = vshll.u32 %v399_v47, 1  ;;  %v698_v52 = vshrl.u32 %v697_v46, 31  ;;  %v699_v53 = vshll.u32 %v695_v50, 1  ;;  %v701_v54 = vshll.u32 %v697_v46, 1 }
  0xeb   : > { %v409_v55 = vadd.s32 1, %v405_v49 }
  0xec   : > { %v404_v56 = vor.u32 %v403_v51, %v402_v48  ;;  %v700_v57 = vor.u32 %v699_v53, %v698_v52  ;;  %v705_v58 = vadd.s32 1, %v701_v54 }
  0xee   : > { %vm406_vm12 = vcmp.ge.u32.totalorder %v404_v56, %v1578_v11  ;;  %v407_v59 = vsub.s32 %v404_v56, %v1578_v11  ;;  %vm702_vm13 = vcmp.ge.u32.totalorder %v700_v57, %v1578_v11  ;;  %v703_v60 = vsub.s32 %v700_v57, %v1578_v11 }
  0xef   : > { %v410_v61 = vsel %vm406_vm12, %v409_v55, %v405_v49  ;;  %v706_v62 = vsel %vm702_vm13, %v705_v58, %v701_v54 }
  0xf0   : > { %v408_v63 = vsel %vm406_vm12, %v407_v59, %v404_v56  ;;  %v411_v1 = vshrl.u32 %v410_v61, 31  ;;  %v414_v2 = vshll.u32 %v410_v61, 1  ;;  %v704_v3 = vsel %vm702_vm13, %v703_v60, %v700_v57 }
  0xf1   : > { %v412_v4 = vshll.u32 %v408_v63, 1  ;;  %v707_v6 = vshrl.u32 %v706_v62, 31  ;;  %v708_v7 = vshll.u32 %v704_v3, 1  ;;  %v710_v8 = vshll.u32 %v706_v62, 1 }
  0xf2   : > { %v418_v9 = vadd.s32 1, %v414_v2 }
  0xf3   : > { %v413_v10 = vor.u32 %v412_v4, %v411_v1  ;;  %v709_v12 = vor.u32 %v708_v7, %v707_v6  ;;  %v714_v13 = vadd.s32 1, %v710_v8 }
  0xf5   : > { %vm415_vm14 = vcmp.ge.u32.totalorder %v413_v10, %v1578_v11  ;;  %v416_v14 = vsub.s32 %v413_v10, %v1578_v11  ;;  %vm711_vm15 = vcmp.ge.u32.totalorder %v709_v12, %v1578_v11  ;;  %v712_v15 = vsub.s32 %v709_v12, %v1578_v11 }
  0xf6   : > { %v419_v16 = vsel %vm415_vm14, %v418_v9, %v414_v2  ;;  %v715_v17 = vsel %vm711_vm15, %v714_v13, %v710_v8 }
  0xf7   : > { %v417_v18 = vsel %vm415_vm14, %v416_v14, %v413_v10  ;;  %v420_v19 = vshrl.u32 %v419_v16, 31  ;;  %v423_v20 = vshll.u32 %v419_v16, 1  ;;  %v713_v21 = vsel %vm711_vm15, %v712_v15, %v709_v12 }
  0xf8   : > { %v421_v22 = vshll.u32 %v417_v18, 1  ;;  %v716_v23 = vshrl.u32 %v715_v17, 31  ;;  %v717_v24 = vshll.u32 %v713_v21, 1  ;;  %v719_v25 = vshll.u32 %v715_v17, 1 }
  0xf9   : > { %v427_v26 = vadd.s32 1, %v423_v20 }
  0xfa   : > { %v422_v27 = vor.u32 %v421_v22, %v420_v19  ;;  %v718_v28 = vor.u32 %v717_v24, %v716_v23  ;;  %v723_v29 = vadd.s32 1, %v719_v25 }
  0xfc   : > { %vm424_vm0 = vcmp.ge.u32.totalorder %v422_v27, %v1578_v11  ;;  %v425_v30 = vsub.s32 %v422_v27, %v1578_v11  ;;  %vm720_vm1 = vcmp.ge.u32.totalorder %v718_v28, %v1578_v11  ;;  %v721_v31 = vsub.s32 %v718_v28, %v1578_v11 }
  0xfd   : > { %v428_v32 = vsel %vm424_vm0, %v427_v26, %v423_v20  ;;  %v724_v33 = vsel %vm720_vm1, %v723_v29, %v719_v25 }
  0xfe   : > { %v426_v34 = vsel %vm424_vm0, %v425_v30, %v422_v27  ;;  %v429_v35 = vshrl.u32 %v428_v32, 31  ;;  %v432_v36 = vshll.u32 %v428_v32, 1  ;;  %v722_v37 = vsel %vm720_vm1, %v721_v31, %v718_v28 }
  0xff   : > { %v430_v38 = vshll.u32 %v426_v34, 1  ;;  %v725_v39 = vshrl.u32 %v724_v33, 31  ;;  %v726_v40 = vshll.u32 %v722_v37, 1  ;;  %v728_v41 = vshll.u32 %v724_v33, 1 }
 0x100   : > { %v436_v42 = vadd.s32 1, %v432_v36 }
 0x101   : > { %v431_v43 = vor.u32 %v430_v38, %v429_v35  ;;  %v727_v44 = vor.u32 %v726_v40, %v725_v39  ;;  %v732_v45 = vadd.s32 1, %v728_v41 }
 0x103   : > { %vm433_vm2 = vcmp.ge.u32.totalorder %v431_v43, %v1578_v11  ;;  %v434_v46 = vsub.s32 %v431_v43, %v1578_v11  ;;  %vm729_vm3 = vcmp.ge.u32.totalorder %v727_v44, %v1578_v11  ;;  %v730_v47 = vsub.s32 %v727_v44, %v1578_v11 }
 0x104   : > { %v437_v48 = vsel %vm433_vm2, %v436_v42, %v432_v36  ;;  %v733_v49 = vsel %vm729_vm3, %v732_v45, %v728_v41 }
 0x105   : > { %v435_v50 = vsel %vm433_vm2, %v434_v46, %v431_v43  ;;  %v438_v51 = vshrl.u32 %v437_v48, 31  ;;  %v441_v52 = vshll.u32 %v437_v48, 1  ;;  %v731_v53 = vsel %vm729_vm3, %v730_v47, %v727_v44 }
 0x106   : > { %v439_v54 = vshll.u32 %v435_v50, 1  ;;  %v734_v55 = vshrl.u32 %v733_v49, 31  ;;  %v735_v56 = vshll.u32 %v731_v53, 1  ;;  %v737_v57 = vshll.u32 %v733_v49, 1 }
 0x107   : > { %v445_v58 = vadd.s32 1, %v441_v52 }
 0x108   : > { %v440_v59 = vor.u32 %v439_v54, %v438_v51  ;;  %v736_v60 = vor.u32 %v735_v56, %v734_v55  ;;  %v741_v61 = vadd.s32 1, %v737_v57 }
 0x10a   : > { %vm442_vm4 = vcmp.ge.u32.totalorder %v440_v59, %v1578_v11  ;;  %v443_v62 = vsub.s32 %v440_v59, %v1578_v11  ;;  %vm738_vm5 = vcmp.ge.u32.totalorder %v736_v60, %v1578_v11  ;;  %v739_v63 = vsub.s32 %v736_v60, %v1578_v11 }
 0x10b   : > { %v446_v1 = vsel %vm442_vm4, %v445_v58, %v441_v52  ;;  %v742_v2 = vsel %vm738_vm5, %v741_v61, %v737_v57 }
 0x10c   : > { %v444_v3 = vsel %vm442_vm4, %v443_v62, %v440_v59  ;;  %v447_v4 = vshrl.u32 %v446_v1, 31  ;;  %v450_v6 = vshll.u32 %v446_v1, 1  ;;  %v740_v7 = vsel %vm738_vm5, %v739_v63, %v736_v60 }
 0x10d   : > { %v448_v8 = vshll.u32 %v444_v3, 1  ;;  %v743_v9 = vshrl.u32 %v742_v2, 31  ;;  %v744_v10 = vshll.u32 %v740_v7, 1  ;;  %v746_v12 = vshll.u32 %v742_v2, 1 }
 0x10e   : > { %v454_v13 = vadd.s32 1, %v450_v6 }
 0x10f   : > { %v449_v14 = vor.u32 %v448_v8, %v447_v4  ;;  %v745_v15 = vor.u32 %v744_v10, %v743_v9  ;;  %v750_v16 = vadd.s32 1, %v746_v12 }
 0x111   : > { %vm451_vm6 = vcmp.ge.u32.totalorder %v449_v14, %v1578_v11  ;;  %v452_v17 = vsub.s32 %v449_v14, %v1578_v11  ;;  %vm747_vm7 = vcmp.ge.u32.totalorder %v745_v15, %v1578_v11  ;;  %v748_v18 = vsub.s32 %v745_v15, %v1578_v11 }
 0x112   : > { %v455_v19 = vsel %vm451_vm6, %v454_v13, %v450_v6  ;;  %v751_v20 = vsel %vm747_vm7, %v750_v16, %v746_v12  ;;  %v796_v16 = vstv %s795_s6 }
 0x113   : > { %v453_v21 = vsel %vm451_vm6, %v452_v17, %v449_v14  ;;  %v456_v22 = vshrl.u32 %v455_v19, 31  ;;  %v459_v23 = vshll.u32 %v455_v19, 1  ;;  %v749_v24 = vsel %vm747_vm7, %v748_v18, %v745_v15 }
 0x114   : > { %v457_v25 = vshll.u32 %v453_v21, 1  ;;  %v752_v26 = vshrl.u32 %v751_v20, 31  ;;  %v753_v27 = vshll.u32 %v749_v24, 1  ;;  %v755_v28 = vshll.u32 %v751_v20, 1 }
 0x115   : > { %v463_v29 = vadd.s32 1, %v459_v23  ;;  %v820_v17 = vand.u32 127, %v188_v0  ;;  %vm797_vm0 = vcmp.eq.s32.totalorder %v796_v16, 1 }
 0x116   : > { %v458_v30 = vor.u32 %v457_v25, %v456_v22  ;;  %v754_v31 = vor.u32 %v753_v27, %v752_v26  ;;  %v759_v32 = vadd.s32 1, %v755_v28  ;;  %v1167_v27 = vld [vmem:[%s1848_s2] ss:$0 sm:$0xff] }
 0x118   : > { %vm460_vm8 = vcmp.ge.u32.totalorder %v458_v30, %v1578_v11  ;;  %v461_v33 = vsub.s32 %v458_v30, %v1578_v11  ;;  %vm756_vm9 = vcmp.ge.u32.totalorder %v754_v31, %v1578_v11  ;;  %v757_v34 = vsub.s32 %v754_v31, %v1578_v11 }
 0x119   : > { %v464_v35 = vsel %vm460_vm8, %v463_v29, %v459_v23  ;;  %v760_v36 = vsel %vm756_vm9, %v759_v32, %v755_v28  ;;  %v825_v23 = vand.u32 1, %v820_v17 }
 0x11a   : > { %v462_v37 = vsel %vm460_vm8, %v461_v33, %v458_v30  ;;  %v465_v38 = vshrl.u32 %v464_v35, 31  ;;  %v468_v39 = vshll.u32 %v464_v35, 1  ;;  %v758_v40 = vsel %vm756_vm9, %v757_v34, %v754_v31 }
 0x11b   : > { %v466_v41 = vshll.u32 %v462_v37, 1  ;;  %v761_v42 = vshrl.u32 %v760_v36, 31  ;;  %v762_v43 = vshll.u32 %v758_v40, 1  ;;  %v764_v44 = vshll.u32 %v760_v36, 1 }
 0x11c   : > { %v472_v45 = vadd.s32 1, %v468_v39  ;;  %vm833_vm9 = vcmp.eq.s32.totalorder %v825_v23, 0  ;;  %v1403_v30 = vmov 0.0  }
 0x11d   : > { %v467_v46 = vor.u32 %v466_v41, %v465_v38  ;;  %v763_v47 = vor.u32 %v762_v43, %v761_v42  ;;  %v768_v48 = vadd.s32 1, %v764_v44  ;;  %v834_v31 = vsel %vm833_vm9, 1.5707964, %v1403_v30 }
 0x11f   : > { %vm469_vm10 = vcmp.ge.u32.totalorder %v467_v46, %v1578_v11  ;;  %v470_v49 = vsub.s32 %v467_v46, %v1578_v11  ;;  %vm765_vm11 = vcmp.ge.u32.totalorder %v763_v47, %v1578_v11  ;;  %v766_v50 = vsub.s32 %v763_v47, %v1578_v11 }
 0x120   : > { %v473_v51 = vsel %vm469_vm10, %v472_v45, %v468_v39  ;;  %v769_v52 = vsel %vm765_vm11, %v768_v48, %v764_v44 }
 0x121   : > { %v471_v53 = vsel %vm469_vm10, %v470_v49, %v467_v46  ;;  %v474_v54 = vshrl.u32 %v473_v51, 31  ;;  %v477_v55 = vshll.u32 %v473_v51, 1  ;;  %v767_v56 = vsel %vm765_vm11, %v766_v50, %v763_v47 }
 0x122   : > { %v475_v57 = vshll.u32 %v471_v53, 1  ;;  %v770_v58 = vshrl.u32 %v769_v52, 31  ;;  %v771_v59 = vshll.u32 %v767_v56, 1  ;;  %v773_v60 = vshll.u32 %v769_v52, 1 }
 0x123   : > { %v481_v61 = vadd.s32 1, %v477_v55 }
 0x124   : > { %v476_v62 = vor.u32 %v475_v57, %v474_v54  ;;  %v772_v63 = vor.u32 %v771_v59, %v770_v58  ;;  %v777_v1 = vadd.s32 1, %v773_v60  ;;  %v1404_v57 = vmov 683565275  }
 0x125   : > { %v1405_v59 = vmov 2475754826  }
 0x126   : > { %vm478_vm12 = vcmp.ge.u32.totalorder %v476_v62, %v1578_v11  ;;  %v479_v2 = vsub.s32 %v476_v62, %v1578_v11  ;;  %vm774_vm13 = vcmp.ge.u32.totalorder %v772_v63, %v1578_v11  ;;  %v775_v3 = vsub.s32 %v772_v63, %v1578_v11 }
 0x127   : > { %v482_v4 = vsel %vm478_vm12, %v481_v61, %v477_v55  ;;  %v778_v6 = vsel %vm774_vm13, %v777_v1, %v773_v60  ;;  %v1406_v61 = vmov 2131351028  }
 0x128   : > { %v480_v7 = vsel %vm478_vm12, %v479_v2, %v476_v62  ;;  %v483_v8 = vshrl.u32 %v482_v4, 31  ;;  %v776_v9 = vsel %vm774_vm13, %v775_v3, %v772_v63  ;;  %v779_v10 = vshrl.u32 %v778_v6, 31 }
 0x129   : > { %v484_v12 = vshll.u32 %v480_v7, 1  ;;  %v780_v13 = vshll.u32 %v776_v9, 1  ;;  %v1407_v63 = vmov 2102212464   ;;  %v1408_v2 = vmov 920167782  }
 0x12b   : > { %v485_v14 = vor.u32 %v484_v12, %v483_v8  ;;  %v781_v15 = vor.u32 %v780_v13, %v779_v10  ;;  %v1409_v12 = vmov 1326507024  }
 0x12d   : > { %vm487_vm14 = vcmp.ge.u32.totalorder %v485_v14, %v1578_v11  ;;  %v488_v18 = vsub.s32 %v485_v14, %v1578_v11  ;;  %vm783_vm15 = vcmp.ge.u32.totalorder %v781_v15, %v1578_v11  ;;  %v784_v19 = vsub.s32 %v781_v15, %v1578_v11 }
 0x12f   : > { %v489_v20 = vsel %vm487_vm14, %v488_v18, %v485_v14  ;;  %v785_v21 = vsel %vm783_vm15, %v784_v19, %v781_v15 }
 0x130   : > { %vm790_vm1 = vcmp.ne.s32.totalorder %v489_v20, 0  ;;  %vm792_vm2 = vcmp.lt.s32.totalorder %v489_v20, 0  ;;  %vm793_vm3 = vcmp.lt.s32.totalorder %v785_v21, 0  ;;  %vm791_vm4 = vcmp.ne.s32.totalorder %v785_v21, 0 }
 0x131   : > { %vm798_vm5 = vmxor %vm792_vm2, %vm797_vm0  ;;  %v802_v22 = vadd.s32 %v489_v20, %v1574_v5  ;;  %v803_v0 = vadd.s32 %v785_v21, %v1574_v5 }
 0x132   : > { %vm799_vm6 = vmxor %vm793_vm3, %vm797_vm0 }
 0x133   : > { %vm800_vm7 = vmand %vm798_vm5, %vm790_vm1 }
 0x134   : > { %vm801_vm8 = vmand %vm799_vm6, %vm791_vm4  ;;  %v804_v24 = vsel %vm800_vm7, %v802_v22, %v489_v20 }
 0x135   : > { %v805_v25 = vsel %vm801_vm8, %v803_v0, %v785_v21  ;;  %v806_v26 = vadd.s32 1, %v804_v24 }
 0x136   : > { %v807_v11 = vadd.s32 1, %v805_v25 }
 0x137   : > { %v808_v28 = vcvt.s32.f32 %v806_v26 }
 0x138   : > { %v809_v29 = vcvt.s32.f32 %v807_v11 }
 0x139   : > { %v817_v32 = vmul.f32 %v1167_v27, %v808_v28 }
 0x13a   : > { %v818_v33 = vmul.f32 %v1167_v27, %v809_v29 }
 0x13b   : > { %v1715_v5 = vadd.f32 %v834_v31, %v817_v32 }
 0x13c   : > { %v1717_v34 = vadd.f32 %v834_v31, %v818_v33 }
 0x13d   : > { %v837_v35 = vand.u32 2147483647, %v1715_v5  ;;  %v840_v36 = vand.u32 2139095040, %v1715_v5  ;;  %vm839_vm8 = vcmp.lt.s32.totalorder %v1715_v5, 0 }
 0x13e   : > { %v941_v37 = vand.u32 2147483647, %v1717_v34  ;;  %v944_v38 = vand.u32 2139095040, %v1717_v34 }
 0x13f   : > { %v841_v39 = vshrl.u32 %v840_v36, 23  ;;  %v844_v40 = vand.u32 8388607, %v837_v35  ;;  %vm838_vm9 = vcmp.le.f32.partialorder %v837_v35, 0.7853982 }
 0x140   : > { %v945_v41 = vshrl.u32 %v944_v38, 23  ;;  %v948_v42 = vand.u32 8388607, %v941_v37 }
 0x141   : > { %v1168_v43 = vadd.s32 4294967169, %v841_v39  ;;  %v845_v46 = vor.u32 8388608, %v844_v40 }
 0x142   : > { %v1172_v44 = vadd.s32 4294967169, %v945_v41  ;;  %v949_v47 = vor.u32 8388608, %v948_v42 }
 0x143   : > { %v847_v45 = vadd.s32 1, %v1168_v43  ;;  %v1727_v53 = vshll.u32 %v845_v46, 8 }
 0x144   : > { %v951_v48 = vadd.s32 1, %v1172_v44  ;;  %v1729_v55 = vshll.u32 %v949_v47, 8 }
 0x145   : > { %vm848_vm10 = vcmp.gt.s32.totalorder %v847_v45, 0 }
 0x146   : > { %v849_v49 = vsel %vm848_vm10, %v847_v45, 0  ;;  %vm952_vm11 = vcmp.gt.s32.totalorder %v951_v48, 0  ;;  %vm943_vm10 = vcmp.lt.s32.totalorder %v1717_v34, 0 }
 0x147   : > { %v850_v50 = vshrl.u32 %v849_v49, 5  ;;  %v851_v51 = vand.u32 31, %v849_v49  ;;  %v953_v52 = vsel %vm952_vm11, %v951_v48, 0  ;;  %vm942_vm11 = vcmp.le.f32.partialorder %v941_v37, 0.7853982 }
 0x148   : > { %v955_v54 = vand.u32 31, %v953_v52  ;;  %v1731_v4 = vshrl.u32 %v953_v52, 5 }
 0x149   : > { %v852_v56 = vsub.s32 32, %v851_v51  ;;  %v854_v58 = vshll.u32 %v1404_v57, %v851_v51  ;;  %v857_v60 = vshll.u32 %v1405_v59, %v851_v51  ;;  %v860_v62 = vshll.u32 %v1406_v61, %v851_v51 }
 0x14a   : > { %v863_v1 = vshll.u32 %v1407_v63, %v851_v51  ;;  %v866_v3 = vshll.u32 %v1408_v2, %v851_v51  ;;  %vm869_vm12 = vcmp.lt.s32.totalorder %v850_v50, 1  ;;  %vm870_vm13 = vcmp.lt.s32.totalorder %v850_v50, 2 }
 0x14b   : > { %v853_v6 = vshrl.u32 %v1404_v57, %v852_v56  ;;  %v855_v7 = vshrl.u32 %v1405_v59, %v852_v56  ;;  %v858_v8 = vshrl.u32 %v1406_v61, %v852_v56  ;;  %v861_v9 = vshrl.u32 %v1407_v63, %v852_v56 }
 0x14c   : > { %v864_v10 = vshrl.u32 %v1408_v2, %v852_v56  ;;  %v867_v13 = vshrl.u32 %v1409_v12, %v852_v56  ;;  %vm872_vm14 = vcmp.lt.s32.totalorder %v850_v50, 4  ;;  %v956_v17 = vsub.s32 32, %v955_v54 }
 0x14d   : > { %v856_v14 = vor.u32 %v855_v7, %v854_v58  ;;  %v859_v15 = vor.u32 %v858_v8, %v857_v60  ;;  %v862_v16 = vor.u32 %v861_v9, %v860_v62  ;;  %vm871_vm15 = vcmp.lt.s32.totalorder %v850_v50, 3 }
 0x14e   : > { %v865_v18 = vor.u32 %v864_v10, %v863_v1  ;;  %v868_v19 = vor.u32 %v867_v13, %v866_v3  ;;  %v958_v20 = vshll.u32 %v1404_v57, %v955_v54  ;;  %v961_v11 = vshll.u32 %v1405_v59, %v955_v54 }
 0x14f   : > { %v873_v21 = vsel %vm869_vm12, %v853_v6, %v856_v14  ;;  %v874_v22 = vsel %vm872_vm14, %v862_v16, 2102212464  ;;  %v877_v0 = vsel %vm869_vm12, %v856_v14, %v859_v15  ;;  %v881_v23 = vsel %vm869_vm12, %v859_v15, %v862_v16 }
 0x150   : > { %v875_v24 = vsel %vm871_vm15, %v859_v15, %v874_v22  ;;  %v878_v25 = vsel %vm872_vm14, %v865_v18, 920167782  ;;  %v882_v26 = vsel %vm872_vm14, %v868_v19, 1326507024  ;;  %v957_v29 = vshrl.u32 %v1404_v57, %v956_v17 }
 0x151   : > { %v879_v27 = vsel %vm871_vm15, %v862_v16, %v878_v25  ;;  %v883_v28 = vsel %vm871_vm15, %v865_v18, %v882_v26  ;;  %v959_v30 = vshrl.u32 %v1405_v59, %v956_v17  ;;  %v876_v31 = vsel %vm870_vm13, %v873_v21, %v875_v24 }
 0x152   : > { %v880_v32 = vsel %vm870_vm13, %v877_v0, %v879_v27  ;;  %v884_v33 = vsel %vm870_vm13, %v881_v23, %v883_v28  ;;  %v962_v36 = vshrl.u32 %v1406_v61, %v956_v17  ;;  %v964_v44 = vshll.u32 %v1406_v61, %v955_v54 }
 0x153   : > { %v1740_v38 = vmul.u32.u64.low %v1727_v53, %v884_v33  ;;  %v1741_v39 = vmul.u32.u64.high %v1727_v53, %v884_v33, %v1740_v38  ;;  %v1744_v40 = vmul.u32.u64.low %v1727_v53, %v880_v32  ;;  %v1745_v41 = vmul.u32.u64.high %v1727_v53, %v880_v32, %v1744_v40 }
 0x154   : > { %v960_v42 = vor.u32 %v959_v30, %v958_v20  ;;  %v963_v43 = vor.u32 %v962_v36, %v961_v11  ;;  %v965_v45 = vshrl.u32 %v1407_v63, %v956_v17  ;;  %v967_v46 = vshll.u32 %v1407_v63, %v955_v54 }
 0x155   : > { %v968_v47 = vshrl.u32 %v1408_v2, %v956_v17  ;;  %v970_v48 = vshll.u32 %v1408_v2, %v955_v54  ;;  %v971_v49 = vshrl.u32 %v1409_v12, %v956_v17  ;;  %v892_v50 = vmul.u32 %v1727_v53, %v876_v31 }
 0x156   : > { %v966_v51 = vor.u32 %v965_v45, %v964_v44  ;;  %vm973_vm0 = vcmp.lt.s32.totalorder %v1731_v4, 1  ;;  %vm974_vm1 = vcmp.lt.s32.totalorder %v1731_v4, 2  ;;  %vm894_vm2 = vc.u32 %v1741_v39, %v1744_v40 }
 0x157   : > { %v895_v52 = vadd.s32 1, %v1745_v41  ;;  %v969_v56 = vor.u32 %v968_v47, %v967_v46  ;;  %vm975_vm3 = vcmp.lt.s32.totalorder %v1731_v4, 3  ;;  %v972_v57 = vor.u32 %v971_v49, %v970_v48 }
 0x158   : > { %vm976_vm4 = vcmp.lt.s32.totalorder %v1731_v4, 4  ;;  %v977_v58 = vsel %vm973_vm0, %v957_v29, %v960_v42  ;;  %v981_v54 = vsel %vm973_vm0, %v960_v42, %v963_v43  ;;  %v985_v61 = vsel %vm973_vm0, %v963_v43, %v966_v51 }
 0x159   : > { %v896_v59 = vsel %vm894_vm2, %v895_v52, %v1745_v41  ;;  %v978_v53 = vsel %vm976_vm4, %v966_v51, 2102212464  ;;  %v982_v60 = vsel %vm976_vm4, %v969_v56, 920167782  ;;  %v986_v2 = vsel %vm976_vm4, %v972_v57, 1326507024 }
 0x15a   : > { %v897_v62 = vadd.s32 %v896_v59, %v892_v50  ;;  %v979_v63 = vsel %vm975_vm3, %v963_v43, %v978_v53  ;;  %v983_v1 = vsel %vm975_vm3, %v966_v51, %v982_v60  ;;  %v987_v7 = vsel %vm975_vm3, %v969_v56, %v986_v2 }
 0x15b   : > { %v980_v3 = vsel %vm974_vm1, %v977_v58, %v979_v63  ;;  %v984_v6 = vsel %vm974_vm1, %v981_v54, %v983_v1  ;;  %v988_v9 = vsel %vm974_vm1, %v985_v61, %v987_v7  ;;  %v893_v27 = vadd.s32 %v1744_v40, %v1741_v39 }
 0x15c   : > { %v898_v8 = vadd.s32 536870912, %v897_v62  ;;  %v1762_v10 = vmul.u32.u64.low %v1729_v55, %v984_v6  ;;  %v1763_v12 = vmul.u32.u64.high %v1729_v55, %v984_v6, %v1762_v10  ;;  %v996_v16 = vmul.u32 %v1729_v55, %v980_v3 }
 0x15d   : > { %v1766_v13 = vmul.u32.u64.low %v1729_v55, %v988_v9  ;;  %v1767_v14 = vmul.u32.u64.high %v1729_v55, %v988_v9, %v1766_v13  ;;  %vm929_vm15 = vweird.f32 %v1715_v5  ;;  %vm1049_vm0 = vcmask 261120  }
 0x15e   : > { %v899_v15 = vshrl.u32 %v898_v8, 30  ;;  %v999_v18 = vadd.s32 1, %v1763_v12  ;;  %vm1033_vm4 = vweird.f32 %v1717_v34 }
 0x15f   : > { %vm998_vm5 = vc.u32 %v1767_v14, %v1762_v10  ;;  %v997_v46 = vadd.s32 %v1762_v10, %v1767_v14 }
 0x160   : > { %v900_v17 = vshll.u32 %v899_v15, 30  ;;  %v1000_v4 = vsel %vm998_vm5, %v999_v18, %v1763_v12  ;;  %v923_v39 = vsub.s32 4, %v899_v15 }
 0x161   : > { %v1001_v20 = vadd.s32 %v1000_v4, %v996_v16 }
 0x162   : > { %v901_v19 = vsub.s32 %v897_v62, %v900_v17  ;;  %v924_v58 = vsel %vm839_vm8, %v923_v39, %v899_v15 }
 0x163   : > { %v1002_v22 = vadd.s32 536870912, %v1001_v20  ;;  %v926_v61 = vsel %vm838_vm9, 0, %v924_v58 }
 0x164   : > { %v903_v21 = vsub.s32 0, %v901_v19  ;;  %v930_v3 = vadd.s32 3, %v926_v61 }
 0x165   : > { %v1003_v23 = vshrl.u32 %v1002_v22, 30 }
 0x166   : > { %v1169_v0 = vmin.u32 %v903_v21, %v901_v19  ;;  %v931_v8 = vand.u32 3, %v930_v3 }
 0x167   : > { %v1004_v25 = vshll.u32 %v1003_v23, 30  ;;  %v1027_v2 = vsub.s32 4, %v1003_v23 }
 0x168   : > { %v905_v24 = vclz %v1169_v0  ;;  %vm936_vm12 = vcmp.eq.s32.totalorder %v931_v8, 2  ;;  %vm933_vm13 = vcmp.eq.s32.totalorder %v931_v8, 0  ;;  %vm932_vm14 = vcmp.lt.s32.totalorder %v931_v8, 2 }
 0x169   : > { %v1005_v11 = vsub.s32 %v1001_v20, %v1004_v25  ;;  %v1028_v7 = vsel %vm943_vm10, %v1027_v2, %v1003_v23 }
 0x16a   : > { %v1170_v26 = vadd.s32 4294967294, %v905_v24  ;;  %v1030_v12 = vsel %vm942_vm11, 0, %v1028_v7 }
 0x16b   : > { %v1007_v28 = vsub.s32 0, %v1005_v11  ;;  %v1034_v16 = vadd.s32 3, %v1030_v12 }
 0x16c   : > { %vm1171_vm6 = vcmp.lt.s32.totalorder %v1170_v26, 0 }
 0x16d   : > { %v908_v55 = vsel %vm1171_vm6, 0, %v1170_v26  ;;  %v1173_v32 = vmin.u32 %v1007_v28, %v1005_v11  ;;  %v1035_v20 = vand.u32 3, %v1034_v16 }
 0x16e   : > { %v909_v29 = vsub.s32 32, %v908_v55  ;;  %v910_v30 = vshll.u32 %v901_v19, %v908_v55  ;;  %v913_v31 = vsub.s32 4294967266, %v908_v55  ;;  %v1045_v19 = vld [vmem:[%s1563_s0] sm:$0xff] }
 0x16f   : > { %v1009_v38 = vclz %v1173_v32  ;;  %vm1040_vm1 = vcmp.eq.s32.totalorder %v1035_v20, 2  ;;  %vm1037_vm2 = vcmp.eq.s32.totalorder %v1035_v20, 0  ;;  %vm1036_vm3 = vcmp.lt.s32.totalorder %v1035_v20, 2 }
 0x170   : > { %v911_v33 = vshrl.u32 %v893_v27, %v909_v29  ;;  %v914_v36 = vadd.s32 127, %v913_v31 }
 0x171   : > { %v1174_v43 = vadd.s32 4294967294, %v1009_v38 }
 0x172   : > { %v912_v41 = vor.u32 %v911_v33, %v910_v30  ;;  %v915_v42 = vshll.u32 %v914_v36, 23 }
 0x173   : > { %vm1175_vm7 = vcmp.lt.s32.totalorder %v1174_v43, 0 }
 0x174   : > { %v916_v44 = vor.u32 4788187, %v915_v42  ;;  %v919_v45 = vcvt.s32.f32 %v912_v41  ;;  %v1012_v40 = vsel %vm1175_vm7, 0, %v1174_v43 }
 0x175   : > { %v1013_v48 = vsub.s32 32, %v1012_v40  ;;  %v1014_v49 = vshll.u32 %v1005_v11, %v1012_v40  ;;  %v1017_v50 = vsub.s32 4294967266, %v1012_v40  ;;  %v1046_v11 = vld [vmem:[%s1563_s0 + $0x8] sm:$0xff] }
 0x176   : > { %v917_v47 = vand.u32 2147483647, %v916_v44 }
 0x177   : > { %v1015_v52 = vshrl.u32 %v997_v46, %v1013_v48  ;;  %v1018_v56 = vadd.s32 127, %v1017_v50 }
 0x178   : > { %v920_v51 = vmul.f32 %v919_v45, %v917_v47 }
 0x179   : > { %v1016_v54 = vor.u32 %v1015_v52, %v1014_v49  ;;  %v1019_v59 = vshll.u32 %v1018_v56, 23 }
 0x17a   : > { %v921_v57 = vxor.u32 2147483648, %v920_v51 }
 0x17b   : > { %v1020_v62 = vor.u32 4788187, %v1019_v59  ;;  %v1023_v63 = vcvt.s32.f32 %v1016_v54 }
 0x17c   : > { %v922_v53 = vsel %vm839_vm8, %v921_v57, %v920_v51 }
 0x17d   : > { %v925_v60 = vsel %vm838_vm9, %v1715_v5, %v922_v53  ;;  %v1021_v1 = vand.u32 2147483647, %v1020_v62 }
 0x17e   : > { %1265 = vcosq.f32 %v925_v60 }
 0x17f   : > { %1267 = vsinq.f32 %v925_v60  ;;  %v1024_v6 = vmul.f32 %v1023_v63, %v1021_v1 }
 0x181   : > { %v1025_v35 = vxor.u32 2147483648, %v1024_v6 }
 0x183   : > { %v1026_v9 = vsel %vm943_vm10, %v1025_v35, %v1024_v6 }
 0x184   : > { %v1029_v10 = vsel %vm942_vm11, %v1717_v34, %v1026_v9 }
 0x185   : > { %1269 = vcosq.f32 %v1029_v10 }
 0x186   : > { %1271 = vsinq.f32 %v1029_v10 }
 0x188   : > { %v1266_v13 = vpop.eup %1265 }
 0x189   : > { %v1268_v14 = vpop.eup %1267  ;;  %v937_v15 = vxor.u32 2147483648, %v1266_v13 }
 0x18a   : > { %v934_v17 = vxor.u32 2147483648, %v1268_v14 }
 0x18b   : > { %v938_v37 = vsel %vm936_vm12, %v937_v15, %v1268_v14 }
 0x18c   : > { %v935_v18 = vsel %vm933_vm13, %v1266_v13, %v934_v17 }
 0x18d   : > { %v939_v4 = vsel %vm932_vm14, %v935_v18, %v938_v37 }
 0x18e   : > { %v940_v21 = vsel %vm929_vm15, nan, %v939_v4 }
 0x18f   : > { %v1047_v22 = vadd.f32 %v1045_v19, %v940_v21  ;;  %v1270_v0 = vpop.eup %1269 }
 0x190   : > { %v1272_v23 = vpop.eup %1271  ;;  %v1041_v5 = vxor.u32 2147483648, %v1270_v0 }
 0x191   : > { %1050 = vst.msk [vmem:[%s184_s19] sm:$0xff] %vm1049_vm0, %v1047_v22  ;;  %v1038_v24 = vxor.u32 2147483648, %v1272_v23 }
 0x192   : > { %v1042_v25 = vsel %vm1040_vm1, %v1041_v5, %v1272_v23 }
 0x193   : > { %v1039_v26 = vsel %vm1037_vm2, %v1270_v0, %v1038_v24 }
 0x194   : > { %v1043_v27 = vsel %vm1036_vm3, %v1039_v26, %v1042_v25 }
 0x195   : > { %v1044_v55 = vsel %vm1033_vm4, nan, %v1043_v27 }
 0x196   : > { %v1048_v28 = vadd.f32 %v1046_v11, %v1044_v55 }
 0x198   : > { %1051 = vst.msk [vmem:[%s184_s19 + $0x8] sm:$0xff] %vm1049_vm0, %v1048_v28 }
 0x199   : > { %1326 = shalt.err (!%p1323_p10)
}
 0x19a   : > { %s1327_s20 = scalar_lea.hbm %s1794_s10, 256  ;;  %s1331_s15 = scalar_lea.hbm %s1849_s3, 512 }
 0x19b   : > { %p1328_p13 = scmp.ne.s32.totalorder %s1794_s10, %s1327_s20  ;;  %p1332_p6 = scmp.lt.u32.totalorder %s1794_s10, %s1849_s3 }
 0x19c   : > { %p1333_p12 = scmp.lt.u32.totalorder %s1331_s15, %s1327_s20  ;;  %p1335_p0 = scmp.lt.u32.totalorder %s1327_s20, %s1794_s10 }
 0x19d   : > { %p1329_p1 = pnand %p1328_p13, %p1857_p3 }
 0x19e   : > { %p1334_p11 = por %p1333_p12, %p1332_p6 }
 0x19f   : > { %p1330_p4 = pneg %p1329_p1 }
 0x1a0   : > { %p1336_p9 = por %p1335_p0, %p1334_p11 }
 0x1a2   : > { %p1337_p2 = pnand %p1336_p9, %p1330_p4 }
 0x1a4   : > { %1340 = shalt.err (!%p1337_p2)
}
 0x1a5   : > { %s1411_s18 = smov 128   ;;  %s1412_s19 = smov 8  }
 0x1a6   : > { %1193 = dma.vmem_to_hbm [thread:$0]  (%p1857_p3), %s1796_s30, 256, %s1794_s10, %s1053_s11, %s1411_s18, %s1411_s18, %s1412_s19  }
 0x1a7 PF: > { %s1083_s28 = sand.u32 1, %s1377_s22   ;;  %p1858_p5 = scmp.ne.s32.totalorder %s1854_s9, 0 }
 0x1a8   : > { %p1859_p8 = scmp.ge.s32.totalorder %s1397_s27, 2  ;;  %s1084_s4 = scalar_lea.sflag [#allocation6], %s1083_s28 }
 0x1aa   : > { %p1200_p7 = pnand %p1859_p8, %p1858_p5 }
 0x1ac   : > { %1372 = dma.done.wait (!%p1200_p7), %s1084_s4, 256  }
 0x1ad   : > { %1374 = vsyncadd (!%p1200_p7), %s1084_s4, 4294967040  ;;  %s23_s27 = sadd.s32 1, %s1397_s27   ;;  %s1860_s22 = smov %s1381_s23 }
 0x1ae   : > { %p20_p10 = scmp.ge.s32.totalorder %s23_s27, 4   ;;  %s1861_s23 = smov %s1385_s24 }
 0x1af   : > { %s1862_s24 = smov %s1501_s8  ;;  %s1863_s25 = smov %s1393_s26 }
 0x1b0   : > { %s1864_s26 = smov %s1866_s29  ;;  %22 = sbr.rel (!%p20_p10) target bundleno = 18 (0x12), region = 73 }
 0x1b7   :  { %1089 = vsyncpa [#allocation5], 1 }
 0x1b8   :  { %1091 = vsyncpa [#allocation5 + $0x1], 1 }
 0x1b9   :  { %1092 = vsyncpa [#allocation6], 1 }
 0x1ba   :  { %1094 = vsyncpa [#allocation6 + $0x1], 1 }

</bundles_post_ra>
